<compile_context>
chip_gen: v5e
topology: v5e:2x2
jax: 0.10.0
libtpu: 0.0.40
codegen_flags: <defaults>
</compile_context>

<pallas_src>
import functools

import jax
import jax.numpy as jnp
from jax import lax
from jax.experimental import pallas as pl
from jax.experimental.pallas import tpu as pltpu

_LN_EPS = 1e-5


def _normalize(x):
    """LayerNorm without the affine part (gamma/beta folded into weights)."""
    mu = jnp.mean(x, axis=-1, keepdims=True)
    xc = x - mu
    var = jnp.mean(xc * xc, axis=-1, keepdims=True)
    return xc * lax.rsqrt(var + _LN_EPS)


def _block_kernel(x_ref, wqkv_ref, bqkv_ref, wp_ref, bp_ref,
                  w1_ref, b1_ref, w2_ref, b2_ref, o_ref,
                  *, num_heads, matmul_dtype):
    NB, T, C = x_ref.shape
    H = num_heads
    hs = C // H

    x = x_ref[...].astype(jnp.float32).reshape(NB * T, C)

    # ---- LayerNorm 1 (affine folded into Wqkv / bqkv at pack time) ----
    h1 = _normalize(x).astype(matmul_dtype)

    # ---- fused QKV projection: one (NB*T, C) x (C, 3C) MXU matmul ----
    qkv = (jnp.dot(h1, wqkv_ref[...], preferred_element_type=jnp.float32)
           + bqkv_ref[0]).astype(matmul_dtype)                     # (NB*T, 3C)

    # causal mask shared by all heads / sequences; finite negative avoids any
    # inf - inf -> NaN hazard.
    row = lax.broadcasted_iota(jnp.int32, (T, T), 0)
    col = lax.broadcasted_iota(jnp.int32, (T, T), 1)
    causal = (row >= col)[None]                                    # (1, T, T)

    # ---- attention: per-head loop, output projection folded into the loop ----
    sa = jnp.zeros((NB * T, C), jnp.float32)
    for h in range(H):                                             # static unroll
        lo = h * hs
        qh = qkv[:, lo:lo + hs].reshape(NB, T, hs)
        kh = qkv[:, C + lo:C + lo + hs].reshape(NB, T, hs)
        vh = qkv[:, 2 * C + lo:2 * C + lo + hs].reshape(NB, T, hs)

        # attention scores -- NO 1/sqrt(head_size) scaling (matches reference Head)
        s = jnp.einsum('btd,bud->btu', qh, kh,
                       preferred_element_type=jnp.float32)         # (NB, T, T)
        s = jnp.where(causal, s, -1e30)

        # softmax with normalization deferred until after the PV matmul
        m = jnp.max(s, axis=-1, keepdims=True)
        e = jnp.exp(s - m)                                         # unnormalized
        denom = jnp.sum(e, axis=-1, keepdims=True)                 # (NB, T, 1)

        ctx = jnp.einsum('btu,bud->btd', e.astype(matmul_dtype), vh,
                         preferred_element_type=jnp.float32)       # (NB, T, hs)
        ctx = ctx * pl.reciprocal(denom, approx=True)

        # fold the output projection into the head loop: no concat, and this
        # head's (T,T) temporaries are dead after the accumulate.
        sa = sa + jnp.dot(ctx.reshape(NB * T, hs).astype(matmul_dtype),
                          wp_ref[h], preferred_element_type=jnp.float32)

    xr = x + sa + bp_ref[0]                                        # residual 1

    # ---- LayerNorm 2 (affine folded into W1/b1) + FeedForward ----
    h2 = _normalize(xr).astype(matmul_dtype)
    f1 = jnp.dot(h2, w1_ref[...], preferred_element_type=jnp.float32) + b1_ref[0]
    f1 = jnp.maximum(f1, 0.0).astype(matmul_dtype)
    f2 = jnp.dot(f1, w2_ref[...], preferred_element_type=jnp.float32) + b2_ref[0]

    o_ref[...] = (xr + f2).reshape(NB, T, C).astype(o_ref.dtype)


def _vmem_limit_bytes():
    """Scoped-VMEM limit: above the 16/32 MiB defaults, below physical capacity."""
    try:
        cap = int(pltpu.get_tpu_info().vmem_capacity_bytes)
    except Exception:
        cap = 64 << 20                       # conservative (v7x per-TC size)
    return int(max(32 << 20, cap * 3 // 4))  # ~96 MiB on v5e/v6e, ~48 MiB on v7x


def _choose_block_batch(B, T, C, hidden, x_itemsize, vmem_limit_bytes, weight_bytes):
    """Sequences per grid step: the largest that fits the VMEM model."""
    # Per-sequence working set: f32 activations + matmul-dtype copies, with only
    # ONE head's (T,T) score/exp temporaries live at a time, plus this
    # sequence's share of the double-buffered input/output x blocks.
    per_seq = (4 * (3 * T * T + 14 * T * C + 2 * T * hidden)
               + 4 * T * C * x_itemsize)
    budget = vmem_limit_bytes * 3 // 4 - weight_bytes   # headroom for compiler temps
    cap = max(1, budget // per_seq)
    target = max(1, pl.cdiv(2048, T))     # enough rows to fill the MXU; cap silly nb
    nb = int(max(1, min(B, cap, target)))
    while B % nb:
        nb -= 1
    # Keep >= 2 grid steps when possible so the "parallel" axis can shard across
    # v7x's two TensorCores (negligible cost on single-TC v5e/v6e).
    while nb > 1 and B // nb < 2:
        nb -= 1
        while B % nb:
            nb -= 1
    return nb


def transformer_block(x, ln1_g, ln1_b, wq, wk, wv, wp, bp,
                      ln2_g, ln2_b, w1, b1, w2, b2,
                      *, nb=None, matmul_dtype=jnp.bfloat16):
    """Block forward (eval mode).

    x: (B, T, C); wq/wk/wv: (H, C, hs) (per-head nn.Linear weights, transposed);
    wp: (H, hs, C) (= proj.weight.T split by head); w1: (C, 4C); w2: (4C, C).
    matmul_dtype=bf16 (default) hits MXU peak on v5e/v6e/v7x with f32
    accumulation; pass jnp.float32 for bit-tighter parity with an f32 reference.
    """
    B, T, C = x.shape
    H, _, hs = wq.shape
    assert H * hs == C
    hidden = w1.shape[1]
    f32 = jnp.float32

    # ---- pack weights (trace-time; runs once under jit) ----
    def pack(w):                                    # (H, C, hs) -> (C, H*hs)
        return jnp.transpose(w, (1, 0, 2)).reshape(C, H * hs)

    wqkv = jnp.concatenate([pack(wq), pack(wk), pack(wv)], axis=1)    # (C, 3C)
    # Fold LN affine transforms into the downstream matmuls:
    #   (x_hat*g + b) @ W = x_hat @ (diag(g) @ W) + (b @ W)
    wqkv_mm = (ln1_g.astype(f32)[:, None] * wqkv).astype(matmul_dtype)
    bqkv = (ln1_b.astype(f32) @ wqkv.astype(f32)).reshape(1, 3 * C)
    w1_mm = (ln2_g.astype(f32)[:, None] * w1).astype(matmul_dtype)
    b1f = (b1.astype(f32) + ln2_b.astype(f32) @ w1.astype(f32)).reshape(1, hidden)
    wp_mm = wp.astype(matmul_dtype)                                   # (H, hs, C)
    w2_mm = w2.astype(matmul_dtype)                                   # (4C, C)

    mm_itemsize = jnp.dtype(matmul_dtype).itemsize
    weight_bytes = ((wqkv_mm.size + wp_mm.size + w1_mm.size + w2_mm.size)
                    * mm_itemsize + (3 * C + C + hidden + C) * 4)

    vmem_limit = _vmem_limit_bytes()
    if nb is None:
        nb = _choose_block_batch(B, T, C, hidden, x.dtype.itemsize,
                                 vmem_limit, weight_bytes)
    assert B % nb == 0, "batch must be divisible by the per-step block batch"
    grid = (B // nb,)

    kernel = functools.partial(_block_kernel, num_heads=H,
                               matmul_dtype=matmul_dtype)

    args = (x, wqkv_mm, bqkv, wp_mm, bp.astype(f32).reshape(1, C),
            w1_mm, b1f, w2_mm, b2.astype(f32).reshape(1, C))

    def build(single_buffer_weights):
        def wspec(shape):
            idx = lambda i: (0,) * len(shape)
            if single_buffer_weights:
                # constant index map -> double-buffering only wastes VMEM
                return pl.BlockSpec(shape, idx, pipeline_mode=pl.Buffered(1))
            return pl.BlockSpec(shape, idx)

        return pl.pallas_call(
            kernel,
            out_shape=jax.ShapeDtypeStruct((B, T, C), x.dtype),
            grid_spec=pltpu.PrefetchScalarGridSpec(
                num_scalar_prefetch=0,
                grid=grid,
                in_specs=[
                    pl.BlockSpec((nb, T, C), lambda i: (i, 0, 0)),   # x
                    wspec((C, 3 * C)),        # Wqkv  (LN1 gamma folded in)
                    wspec((1, 3 * C)),        # bqkv  (LN1 beta folded in)
                    wspec((H, hs, C)),        # Wproj, per head
                    wspec((1, C)),            # bproj
                    wspec((C, hidden)),       # W1    (LN2 gamma folded in)
                    wspec((1, hidden)),       # b1    (LN2 beta folded in)
                    wspec((hidden, C)),       # W2
                    wspec((1, C)),            # b2
                ],
                out_specs=pl.BlockSpec((nb, T, C), lambda i: (i, 0, 0)),
            ),
            compiler_params=pltpu.CompilerParams(
                dimension_semantics=("parallel",),
                vmem_limit_bytes=int(vmem_limit)),
        )

    try:
        return build(True)(*args)
    except Exception:
        # Some Pallas versions may reject pipeline_mode=pl.Buffered(1);
        # fall back to the default double-buffered weight blocks.
        return build(False)(*args)


def _reference(x, ln1_g, ln1_b, wq, wk, wv, wp, bp, ln2_g, ln2_b, w1, b1, w2, b2):
    # Pure-JAX f32 reference matching the PyTorch Block forward (eval mode).
    def ln(t, g, b):
        mu = t.mean(-1, keepdims=True)
        var = ((t - mu) ** 2).mean(-1, keepdims=True)
        return (t - mu) / jnp.sqrt(var + _LN_EPS) * g + b

    h = ln(x, ln1_g, ln1_b)
    q = jnp.einsum('btc,hcs->bhts', h, wq)
    k = jnp.einsum('btc,hcs->bhts', h, wk)
    v = jnp.einsum('btc,hcs->bhts', h, wv)
    wei = jnp.einsum('bhts,bhus->bhtu', q, k)          # no 1/sqrt(hs), as in Head
    T = x.shape[1]
    mask = jnp.tril(jnp.ones((T, T), dtype=bool))
    wei = jnp.where(mask[None, None], wei, -jnp.inf)
    p = jax.nn.softmax(wei, axis=-1)
    out = jnp.einsum('bhtu,bhus->bhts', p, v)
    sa = jnp.einsum('bhts,hsn->btn', out, wp) + bp
    x1 = x + sa
    h2 = ln(x1, ln2_g, ln2_b)
    ff = jnp.maximum(h2 @ w1 + b1, 0.0) @ w2 + b2
    return x1 + ff


if __name__ == "__main__":
    # Small shapes consistent with the module (scaled-down n_embd / block_size).
    B, T = 2, 16
    n_embd = 32            # module uses 384; scaled down
    n_head = 4             # module uses 6
    head_size = n_embd // n_head
    hidden = 4 * n_embd

    key = jax.random.PRNGKey(0)
    ks = jax.random.split(key, 16)
    scale = 0.05

    x = jax.random.normal(ks[0], (B, T, n_embd), jnp.float32)
    wq = scale * jax.random.normal(ks[1], (n_head, n_embd, head_size), jnp.float32)
    wk = scale * jax.random.normal(ks[2], (n_head, n_embd, head_size), jnp.float32)
    wv = scale * jax.random.normal(ks[3], (n_head, n_embd, head_size), jnp.float32)
    wp = scale * jax.random.normal(ks[4], (n_head, head_size, n_embd), jnp.float32)
    bp = scale * jax.random.normal(ks[5], (n_embd,), jnp.float32)
    g1 = 1.0 + 0.1 * jax.random.normal(ks[6], (n_embd,), jnp.float32)
    b1 = 0.1 * jax.random.normal(ks[7], (n_embd,), jnp.float32)
    g2 = 1.0 + 0.1 * jax.random.normal(ks[8], (n_embd,), jnp.float32)
    b2 = 0.1 * jax.random.normal(ks[9], (n_embd,), jnp.float32)
    w1 = scale * jax.random.normal(ks[10], (n_embd, hidden), jnp.float32)
    bf1 = scale * jax.random.normal(ks[11], (hidden,), jnp.float32)
    w2 = scale * jax.random.normal(ks[12], (hidden, n_embd), jnp.float32)
    bf2 = scale * jax.random.normal(ks[13], (n_embd,), jnp.float32)

    ref = _reference(x, g1, b1, wq, wk, wv, wp, bp, g2, b2, w1, bf1, w2, bf2)

    # 1) default bf16-matmul path (production config): loose tolerance for the
    #    bf16 rounding + approx reciprocal.
    out_bf16 = transformer_block(x, g1, b1, wq, wk, wv, wp, bp,
                                 g2, b2, w1, bf1, w2, bf2)
    out_bf16 = jax.block_until_ready(out_bf16)
    assert out_bf16.shape == (B, T, n_embd)
    assert jnp.allclose(out_bf16, ref, atol=3e-2, rtol=3e-2), \
        float(jnp.max(jnp.abs(out_bf16 - ref)))

    # 2) f32-matmul path: tight semantic check (only the approx EUP reciprocal
    #    in the softmax normalization differs from the reference).
    out_f32 = transformer_block(x, g1, b1, wq, wk, wv, wp, bp,
                                g2, b2, w1, bf1, w2, bf2,
                                matmul_dtype=jnp.float32)
    out_f32 = jax.block_until_ready(out_f32)
    assert jnp.allclose(out_f32, ref, atol=5e-3, rtol=5e-3), \
        float(jnp.max(jnp.abs(out_f32 - ref)))

    print("KERNEL_OK")
</pallas_src>

<mosaic_0001>
module attributes {stable_mosaic.version = 11 : i64} {
  func.func @_block_kernel(%arg0: i32, %arg1: memref<1x16x32xf32, #tpu.memory_space<vmem>>, %arg2: memref<32x96xbf16, #tpu.memory_space<vmem>>, %arg3: memref<1x96xf32, #tpu.memory_space<vmem>>, %arg4: memref<4x8x32xbf16, #tpu.memory_space<vmem>>, %arg5: memref<1x32xf32, #tpu.memory_space<vmem>>, %arg6: memref<32x128xbf16, #tpu.memory_space<vmem>>, %arg7: memref<1x128xf32, #tpu.memory_space<vmem>>, %arg8: memref<128x32xbf16, #tpu.memory_space<vmem>>, %arg9: memref<1x32xf32, #tpu.memory_space<vmem>>, %arg10: memref<1x16x32xf32, #tpu.memory_space<vmem>>) attributes {dimension_semantics = [#tpu.dimension_semantics<parallel>], iteration_bounds = array<i64: 2>, scalar_prefetch = 0 : i64, scratch_operands = 0 : i64, tpu.core_type = #tpu.core_type<tc>, window_params = [{transform_indices = @transform_0, window_bounds = array<i64: 1, 16, 32>}, {pipeline_mode = #tpu.pipeline_mode<synchronous>, transform_indices = @transform_1, window_bounds = array<i64: 32, 96>}, {pipeline_mode = #tpu.pipeline_mode<synchronous>, transform_indices = @transform_2, window_bounds = array<i64: 1, 96>}, {pipeline_mode = #tpu.pipeline_mode<synchronous>, transform_indices = @transform_3, window_bounds = array<i64: 4, 8, 32>}, {pipeline_mode = #tpu.pipeline_mode<synchronous>, transform_indices = @transform_4, window_bounds = array<i64: 1, 32>}, {pipeline_mode = #tpu.pipeline_mode<synchronous>, transform_indices = @transform_5, window_bounds = array<i64: 32, 128>}, {pipeline_mode = #tpu.pipeline_mode<synchronous>, transform_indices = @transform_6, window_bounds = array<i64: 1, 128>}, {pipeline_mode = #tpu.pipeline_mode<synchronous>, transform_indices = @transform_7, window_bounds = array<i64: 128, 32>}, {pipeline_mode = #tpu.pipeline_mode<synchronous>, transform_indices = @transform_8, window_bounds = array<i64: 1, 32>}, {transform_indices = @transform_9, window_bounds = array<i64: 1, 16, 32>}]} {
    %c0 = arith.constant 0 : index
    %c0_0 = arith.constant 0 : index
    %c0_1 = arith.constant 0 : index
    %0 = vector.load %arg1[%c0, %c0_0, %c0_1] : memref<1x16x32xf32, #tpu.memory_space<vmem>>, vector<1x16x32xf32>
    %1 = vector.shape_cast %0 : vector<1x16x32xf32> to vector<16x32xf32>
    %cst = arith.constant dense<0.000000e+00> : vector<16xf32>
    %2 = vector.multi_reduction <add>, %1, %cst [1] : vector<16x32xf32> to vector<16xf32>
    %3 = vector.shape_cast %2 : vector<16xf32> to vector<16x1xf32>
    %cst_2 = arith.constant 3.200000e+01 : f32
    %4 = vector.broadcast %cst_2 : f32 to vector<16x1xf32>
    %5 = arith.divf %3, %4 : vector<16x1xf32>
    %6 = vector.broadcast %5 : vector<16x1xf32> to vector<16x32xf32>
    %7 = arith.subf %1, %6 : vector<16x32xf32>
    %8 = arith.mulf %7, %7 : vector<16x32xf32>
    %cst_3 = arith.constant dense<0.000000e+00> : vector<16xf32>
    %9 = vector.multi_reduction <add>, %8, %cst_3 [1] : vector<16x32xf32> to vector<16xf32>
    %10 = vector.shape_cast %9 : vector<16xf32> to vector<16x1xf32>
    %cst_4 = arith.constant 3.200000e+01 : f32
    %11 = vector.broadcast %cst_4 : f32 to vector<16x1xf32>
    %12 = arith.divf %10, %11 : vector<16x1xf32>
    %cst_5 = arith.constant 9.99999974E-6 : f32
    %13 = vector.broadcast %cst_5 : f32 to vector<16x1xf32>
    %14 = arith.addf %12, %13 : vector<16x1xf32>
    %15 = math.rsqrt %14 : vector<16x1xf32>
    %16 = vector.broadcast %15 : vector<16x1xf32> to vector<16x32xf32>
    %17 = arith.mulf %7, %16 : vector<16x32xf32>
    %18 = arith.truncf %17 : vector<16x32xf32> to vector<16x32xbf16>
    %c0_6 = arith.constant 0 : index
    %c0_7 = arith.constant 0 : index
    %19 = vector.load %arg2[%c0_6, %c0_7] : memref<32x96xbf16, #tpu.memory_space<vmem>>, vector<32x96xbf16>
    %cst_8 = arith.constant dense<0.000000e+00> : vector<16x96xf32>
    %20 = tpu.matmul %18, %19, %cst_8 {dimension_numbers = #tpu.dot_dimension_numbers<[1], [0], [0], [1], [0, 0, 1, 1], [], []>} : vector<16x32xbf16>, vector<32x96xbf16>, vector<16x96xf32> -> vector<16x96xf32>
    %c0_9 = arith.constant 0 : index
    %c0_10 = arith.constant 0 : index
    %21 = vector.load %arg3[%c0_9, %c0_10] : memref<1x96xf32, #tpu.memory_space<vmem>>, vector<1x96xf32>
    %22 = vector.shape_cast %21 : vector<1x96xf32> to vector<96xf32>
    %23 = vector.shape_cast %22 : vector<96xf32> to vector<1x96xf32>
    %24 = vector.broadcast %23 : vector<1x96xf32> to vector<16x96xf32>
    %25 = arith.addf %20, %24 : vector<16x96xf32>
    %26 = arith.truncf %25 : vector<16x96xf32> to vector<16x96xbf16>
    %27 = tpu.iota {dimensions = array<i32: 0>} : vector<16x16xi32>
    %28 = tpu.iota {dimensions = array<i32: 1>} : vector<16x16xi32>
    %29 = arith.cmpi sge, %27, %28 : vector<16x16xi32>
    %30 = vector.shape_cast %29 : vector<16x16xi1> to vector<1x16x16xi1>
    %cst_11 = arith.constant 0.000000e+00 : f32
    %31 = vector.broadcast %cst_11 : f32 to vector<16x32xf32>
    %32 = vector.extract_strided_slice %26 {offsets = [0, 0], sizes = [16, 8], strides = [1, 1]} : vector<16x96xbf16> to vector<16x8xbf16>
    %33 = vector.shape_cast %32 : vector<16x8xbf16> to vector<1x16x8xbf16>
    %34 = vector.extract_strided_slice %26 {offsets = [0, 32], sizes = [16, 8], strides = [1, 1]} : vector<16x96xbf16> to vector<16x8xbf16>
    %35 = vector.shape_cast %34 : vector<16x8xbf16> to vector<1x16x8xbf16>
    %36 = vector.extract_strided_slice %26 {offsets = [0, 64], sizes = [16, 8], strides = [1, 1]} : vector<16x96xbf16> to vector<16x8xbf16>
    %37 = vector.shape_cast %36 : vector<16x8xbf16> to vector<1x16x8xbf16>
    "tpu.trace_start"() <{level = 10 : i32, message = "btd,bud->btu"}> : () -> ()
    %cst_12 = arith.constant dense<0.000000e+00> : vector<1x16x16xf32>
    %38 = tpu.matmul %33, %35, %cst_12 {dimension_numbers = #tpu.dot_dimension_numbers<[2], [2], [1], [1], [0, 0, 0, 1, 1, 1], [0], [0]>} : vector<1x16x8xbf16>, vector<1x16x8xbf16>, vector<1x16x16xf32> -> vector<1x16x16xf32>
    %cst_13 = arith.constant -1.000000e+30 : f32
    "tpu.trace_stop"() : () -> ()
    %39 = vector.broadcast %cst_13 : f32 to vector<1x16x16xf32>
    %40 = arith.select %30, %38, %39 : vector<1x16x16xi1>, vector<1x16x16xf32>
    %cst_14 = arith.constant dense<0xFF800000> : vector<1x16xf32>
    %41 = vector.multi_reduction <maximumf>, %40, %cst_14 [2] : vector<1x16x16xf32> to vector<1x16xf32>
    %42 = vector.shape_cast %41 : vector<1x16xf32> to vector<1x16x1xf32>
    %43 = vector.broadcast %42 : vector<1x16x1xf32> to vector<1x16x16xf32>
    %44 = arith.subf %40, %43 : vector<1x16x16xf32>
    %45 = math.exp %44 : vector<1x16x16xf32>
    %cst_15 = arith.constant dense<0.000000e+00> : vector<1x16xf32>
    %46 = vector.multi_reduction <add>, %45, %cst_15 [2] : vector<1x16x16xf32> to vector<1x16xf32>
    %47 = vector.shape_cast %46 : vector<1x16xf32> to vector<1x16x1xf32>
    %48 = arith.truncf %45 : vector<1x16x16xf32> to vector<1x16x16xbf16>
    "tpu.trace_start"() <{level = 10 : i32, message = "btu,bud->btd"}> : () -> ()
    %cst_16 = arith.constant dense<0.000000e+00> : vector<1x16x8xf32>
    %49 = tpu.matmul %48, %37, %cst_16 {dimension_numbers = #tpu.dot_dimension_numbers<[2], [1], [1], [2], [0, 0, 0, 1, 1, 2], [0], [0]>} : vector<1x16x16xbf16>, vector<1x16x8xbf16>, vector<1x16x8xf32> -> vector<1x16x8xf32>
    "tpu.trace_stop"() : () -> ()
    %50 = tpu.reciprocal %47 {approx = true} : vector<1x16x1xf32> -> vector<1x16x1xf32>
    %51 = vector.broadcast %50 : vector<1x16x1xf32> to vector<1x16x8xf32>
    %52 = arith.mulf %49, %51 : vector<1x16x8xf32>
    %53 = vector.shape_cast %52 : vector<1x16x8xf32> to vector<16x8xf32>
    %54 = arith.truncf %53 : vector<16x8xf32> to vector<16x8xbf16>
    %c0_17 = arith.constant 0 : index
    %c0_18 = arith.constant 0 : index
    %c0_19 = arith.constant 0 : index
    %55 = vector.load %arg4[%c0_17, %c0_18, %c0_19] : memref<4x8x32xbf16, #tpu.memory_space<vmem>>, vector<1x8x32xbf16>
    %56 = vector.shape_cast %55 : vector<1x8x32xbf16> to vector<8x32xbf16>
    %cst_20 = arith.constant dense<0.000000e+00> : vector<16x32xf32>
    %57 = tpu.matmul %54, %56, %cst_20 {dimension_numbers = #tpu.dot_dimension_numbers<[1], [0], [0], [1], [0, 0, 1, 1], [], []>} : vector<16x8xbf16>, vector<8x32xbf16>, vector<16x32xf32> -> vector<16x32xf32>
    %58 = arith.addf %31, %57 : vector<16x32xf32>
    %59 = vector.extract_strided_slice %26 {offsets = [0, 8], sizes = [16, 8], strides = [1, 1]} : vector<16x96xbf16> to vector<16x8xbf16>
    %60 = vector.shape_cast %59 : vector<16x8xbf16> to vector<1x16x8xbf16>
    %61 = vector.extract_strided_slice %26 {offsets = [0, 40], sizes = [16, 8], strides = [1, 1]} : vector<16x96xbf16> to vector<16x8xbf16>
    %62 = vector.shape_cast %61 : vector<16x8xbf16> to vector<1x16x8xbf16>
    %63 = vector.extract_strided_slice %26 {offsets = [0, 72], sizes = [16, 8], strides = [1, 1]} : vector<16x96xbf16> to vector<16x8xbf16>
    %64 = vector.shape_cast %63 : vector<16x8xbf16> to vector<1x16x8xbf16>
    "tpu.trace_start"() <{level = 10 : i32, message = "btd,bud->btu"}> : () -> ()
    %cst_21 = arith.constant dense<0.000000e+00> : vector<1x16x16xf32>
    %65 = tpu.matmul %60, %62, %cst_21 {dimension_numbers = #tpu.dot_dimension_numbers<[2], [2], [1], [1], [0, 0, 0, 1, 1, 1], [0], [0]>} : vector<1x16x8xbf16>, vector<1x16x8xbf16>, vector<1x16x16xf32> -> vector<1x16x16xf32>
    %cst_22 = arith.constant -1.000000e+30 : f32
    "tpu.trace_stop"() : () -> ()
    %66 = vector.broadcast %cst_22 : f32 to vector<1x16x16xf32>
    %67 = arith.select %30, %65, %66 : vector<1x16x16xi1>, vector<1x16x16xf32>
    %cst_23 = arith.constant dense<0xFF800000> : vector<1x16xf32>
    %68 = vector.multi_reduction <maximumf>, %67, %cst_23 [2] : vector<1x16x16xf32> to vector<1x16xf32>
    %69 = vector.shape_cast %68 : vector<1x16xf32> to vector<1x16x1xf32>
    %70 = vector.broadcast %69 : vector<1x16x1xf32> to vector<1x16x16xf32>
    %71 = arith.subf %67, %70 : vector<1x16x16xf32>
    %72 = math.exp %71 : vector<1x16x16xf32>
    %cst_24 = arith.constant dense<0.000000e+00> : vector<1x16xf32>
    %73 = vector.multi_reduction <add>, %72, %cst_24 [2] : vector<1x16x16xf32> to vector<1x16xf32>
    %74 = vector.shape_cast %73 : vector<1x16xf32> to vector<1x16x1xf32>
    %75 = arith.truncf %72 : vector<1x16x16xf32> to vector<1x16x16xbf16>
    "tpu.trace_start"() <{level = 10 : i32, message = "btu,bud->btd"}> : () -> ()
    %cst_25 = arith.constant dense<0.000000e+00> : vector<1x16x8xf32>
    %76 = tpu.matmul %75, %64, %cst_25 {dimension_numbers = #tpu.dot_dimension_numbers<[2], [1], [1], [2], [0, 0, 0, 1, 1, 2], [0], [0]>} : vector<1x16x16xbf16>, vector<1x16x8xbf16>, vector<1x16x8xf32> -> vector<1x16x8xf32>
    "tpu.trace_stop"() : () -> ()
    %77 = tpu.reciprocal %74 {approx = true} : vector<1x16x1xf32> -> vector<1x16x1xf32>
    %78 = vector.broadcast %77 : vector<1x16x1xf32> to vector<1x16x8xf32>
    %79 = arith.mulf %76, %78 : vector<1x16x8xf32>
    %80 = vector.shape_cast %79 : vector<1x16x8xf32> to vector<16x8xf32>
    %81 = arith.truncf %80 : vector<16x8xf32> to vector<16x8xbf16>
    %c1 = arith.constant 1 : index
    %c0_26 = arith.constant 0 : index
    %c0_27 = arith.constant 0 : index
    %82 = vector.load %arg4[%c1, %c0_26, %c0_27] : memref<4x8x32xbf16, #tpu.memory_space<vmem>>, vector<1x8x32xbf16>
    %83 = vector.shape_cast %82 : vector<1x8x32xbf16> to vector<8x32xbf16>
    %cst_28 = arith.constant dense<0.000000e+00> : vector<16x32xf32>
    %84 = tpu.matmul %81, %83, %cst_28 {dimension_numbers = #tpu.dot_dimension_numbers<[1], [0], [0], [1], [0, 0, 1, 1], [], []>} : vector<16x8xbf16>, vector<8x32xbf16>, vector<16x32xf32> -> vector<16x32xf32>
    %85 = arith.addf %58, %84 : vector<16x32xf32>
    %86 = vector.extract_strided_slice %26 {offsets = [0, 16], sizes = [16, 8], strides = [1, 1]} : vector<16x96xbf16> to vector<16x8xbf16>
    %87 = vector.shape_cast %86 : vector<16x8xbf16> to vector<1x16x8xbf16>
    %88 = vector.extract_strided_slice %26 {offsets = [0, 48], sizes = [16, 8], strides = [1, 1]} : vector<16x96xbf16> to vector<16x8xbf16>
    %89 = vector.shape_cast %88 : vector<16x8xbf16> to vector<1x16x8xbf16>
    %90 = vector.extract_strided_slice %26 {offsets = [0, 80], sizes = [16, 8], strides = [1, 1]} : vector<16x96xbf16> to vector<16x8xbf16>
    %91 = vector.shape_cast %90 : vector<16x8xbf16> to vector<1x16x8xbf16>
    "tpu.trace_start"() <{level = 10 : i32, message = "btd,bud->btu"}> : () -> ()
    %cst_29 = arith.constant dense<0.000000e+00> : vector<1x16x16xf32>
    %92 = tpu.matmul %87, %89, %cst_29 {dimension_numbers = #tpu.dot_dimension_numbers<[2], [2], [1], [1], [0, 0, 0, 1, 1, 1], [0], [0]>} : vector<1x16x8xbf16>, vector<1x16x8xbf16>, vector<1x16x16xf32> -> vector<1x16x16xf32>
    %cst_30 = arith.constant -1.000000e+30 : f32
    "tpu.trace_stop"() : () -> ()
    %93 = vector.broadcast %cst_30 : f32 to vector<1x16x16xf32>
    %94 = arith.select %30, %92, %93 : vector<1x16x16xi1>, vector<1x16x16xf32>
    %cst_31 = arith.constant dense<0xFF800000> : vector<1x16xf32>
    %95 = vector.multi_reduction <maximumf>, %94, %cst_31 [2] : vector<1x16x16xf32> to vector<1x16xf32>
    %96 = vector.shape_cast %95 : vector<1x16xf32> to vector<1x16x1xf32>
    %97 = vector.broadcast %96 : vector<1x16x1xf32> to vector<1x16x16xf32>
    %98 = arith.subf %94, %97 : vector<1x16x16xf32>
    %99 = math.exp %98 : vector<1x16x16xf32>
    %cst_32 = arith.constant dense<0.000000e+00> : vector<1x16xf32>
    %100 = vector.multi_reduction <add>, %99, %cst_32 [2] : vector<1x16x16xf32> to vector<1x16xf32>
    %101 = vector.shape_cast %100 : vector<1x16xf32> to vector<1x16x1xf32>
    %102 = arith.truncf %99 : vector<1x16x16xf32> to vector<1x16x16xbf16>
    "tpu.trace_start"() <{level = 10 : i32, message = "btu,bud->btd"}> : () -> ()
    %cst_33 = arith.constant dense<0.000000e+00> : vector<1x16x8xf32>
    %103 = tpu.matmul %102, %91, %cst_33 {dimension_numbers = #tpu.dot_dimension_numbers<[2], [1], [1], [2], [0, 0, 0, 1, 1, 2], [0], [0]>} : vector<1x16x16xbf16>, vector<1x16x8xbf16>, vector<1x16x8xf32> -> vector<1x16x8xf32>
    "tpu.trace_stop"() : () -> ()
    %104 = tpu.reciprocal %101 {approx = true} : vector<1x16x1xf32> -> vector<1x16x1xf32>
    %105 = vector.broadcast %104 : vector<1x16x1xf32> to vector<1x16x8xf32>
    %106 = arith.mulf %103, %105 : vector<1x16x8xf32>
    %107 = vector.shape_cast %106 : vector<1x16x8xf32> to vector<16x8xf32>
    %108 = arith.truncf %107 : vector<16x8xf32> to vector<16x8xbf16>
    %c2 = arith.constant 2 : index
    %c0_34 = arith.constant 0 : index
    %c0_35 = arith.constant 0 : index
    %109 = vector.load %arg4[%c2, %c0_34, %c0_35] : memref<4x8x32xbf16, #tpu.memory_space<vmem>>, vector<1x8x32xbf16>
    %110 = vector.shape_cast %109 : vector<1x8x32xbf16> to vector<8x32xbf16>
    %cst_36 = arith.constant dense<0.000000e+00> : vector<16x32xf32>
    %111 = tpu.matmul %108, %110, %cst_36 {dimension_numbers = #tpu.dot_dimension_numbers<[1], [0], [0], [1], [0, 0, 1, 1], [], []>} : vector<16x8xbf16>, vector<8x32xbf16>, vector<16x32xf32> -> vector<16x32xf32>
    %112 = arith.addf %85, %111 : vector<16x32xf32>
    %113 = vector.extract_strided_slice %26 {offsets = [0, 24], sizes = [16, 8], strides = [1, 1]} : vector<16x96xbf16> to vector<16x8xbf16>
    %114 = vector.shape_cast %113 : vector<16x8xbf16> to vector<1x16x8xbf16>
    %115 = vector.extract_strided_slice %26 {offsets = [0, 56], sizes = [16, 8], strides = [1, 1]} : vector<16x96xbf16> to vector<16x8xbf16>
    %116 = vector.shape_cast %115 : vector<16x8xbf16> to vector<1x16x8xbf16>
    %117 = vector.extract_strided_slice %26 {offsets = [0, 88], sizes = [16, 8], strides = [1, 1]} : vector<16x96xbf16> to vector<16x8xbf16>
    %118 = vector.shape_cast %117 : vector<16x8xbf16> to vector<1x16x8xbf16>
    "tpu.trace_start"() <{level = 10 : i32, message = "btd,bud->btu"}> : () -> ()
    %cst_37 = arith.constant dense<0.000000e+00> : vector<1x16x16xf32>
    %119 = tpu.matmul %114, %116, %cst_37 {dimension_numbers = #tpu.dot_dimension_numbers<[2], [2], [1], [1], [0, 0, 0, 1, 1, 1], [0], [0]>} : vector<1x16x8xbf16>, vector<1x16x8xbf16>, vector<1x16x16xf32> -> vector<1x16x16xf32>
    %cst_38 = arith.constant -1.000000e+30 : f32
    "tpu.trace_stop"() : () -> ()
    %120 = vector.broadcast %cst_38 : f32 to vector<1x16x16xf32>
    %121 = arith.select %30, %119, %120 : vector<1x16x16xi1>, vector<1x16x16xf32>
    %cst_39 = arith.constant dense<0xFF800000> : vector<1x16xf32>
    %122 = vector.multi_reduction <maximumf>, %121, %cst_39 [2] : vector<1x16x16xf32> to vector<1x16xf32>
    %123 = vector.shape_cast %122 : vector<1x16xf32> to vector<1x16x1xf32>
    %124 = vector.broadcast %123 : vector<1x16x1xf32> to vector<1x16x16xf32>
    %125 = arith.subf %121, %124 : vector<1x16x16xf32>
    %126 = math.exp %125 : vector<1x16x16xf32>
    %cst_40 = arith.constant dense<0.000000e+00> : vector<1x16xf32>
    %127 = vector.multi_reduction <add>, %126, %cst_40 [2] : vector<1x16x16xf32> to vector<1x16xf32>
    %128 = vector.shape_cast %127 : vector<1x16xf32> to vector<1x16x1xf32>
    %129 = arith.truncf %126 : vector<1x16x16xf32> to vector<1x16x16xbf16>
    "tpu.trace_start"() <{level = 10 : i32, message = "btu,bud->btd"}> : () -> ()
    %cst_41 = arith.constant dense<0.000000e+00> : vector<1x16x8xf32>
    %130 = tpu.matmul %129, %118, %cst_41 {dimension_numbers = #tpu.dot_dimension_numbers<[2], [1], [1], [2], [0, 0, 0, 1, 1, 2], [0], [0]>} : vector<1x16x16xbf16>, vector<1x16x8xbf16>, vector<1x16x8xf32> -> vector<1x16x8xf32>
    "tpu.trace_stop"() : () -> ()
    %131 = tpu.reciprocal %128 {approx = true} : vector<1x16x1xf32> -> vector<1x16x1xf32>
    %132 = vector.broadcast %131 : vector<1x16x1xf32> to vector<1x16x8xf32>
    %133 = arith.mulf %130, %132 : vector<1x16x8xf32>
    %134 = vector.shape_cast %133 : vector<1x16x8xf32> to vector<16x8xf32>
    %135 = arith.truncf %134 : vector<16x8xf32> to vector<16x8xbf16>
    %c3 = arith.constant 3 : index
    %c0_42 = arith.constant 0 : index
    %c0_43 = arith.constant 0 : index
    %136 = vector.load %arg4[%c3, %c0_42, %c0_43] : memref<4x8x32xbf16, #tpu.memory_space<vmem>>, vector<1x8x32xbf16>
    %137 = vector.shape_cast %136 : vector<1x8x32xbf16> to vector<8x32xbf16>
    %cst_44 = arith.constant dense<0.000000e+00> : vector<16x32xf32>
    %138 = tpu.matmul %135, %137, %cst_44 {dimension_numbers = #tpu.dot_dimension_numbers<[1], [0], [0], [1], [0, 0, 1, 1], [], []>} : vector<16x8xbf16>, vector<8x32xbf16>, vector<16x32xf32> -> vector<16x32xf32>
    %139 = arith.addf %112, %138 : vector<16x32xf32>
    %140 = arith.addf %1, %139 : vector<16x32xf32>
    %c0_45 = arith.constant 0 : index
    %c0_46 = arith.constant 0 : index
    %141 = vector.load %arg5[%c0_45, %c0_46] : memref<1x32xf32, #tpu.memory_space<vmem>>, vector<1x32xf32>
    %142 = vector.shape_cast %141 : vector<1x32xf32> to vector<32xf32>
    %143 = vector.shape_cast %142 : vector<32xf32> to vector<1x32xf32>
    %144 = vector.broadcast %143 : vector<1x32xf32> to vector<16x32xf32>
    %145 = arith.addf %140, %144 : vector<16x32xf32>
    %cst_47 = arith.constant dense<0.000000e+00> : vector<16xf32>
    %146 = vector.multi_reduction <add>, %145, %cst_47 [1] : vector<16x32xf32> to vector<16xf32>
    %147 = vector.shape_cast %146 : vector<16xf32> to vector<16x1xf32>
    %cst_48 = arith.constant 3.200000e+01 : f32
    %148 = vector.broadcast %cst_48 : f32 to vector<16x1xf32>
    %149 = arith.divf %147, %148 : vector<16x1xf32>
    %150 = vector.broadcast %149 : vector<16x1xf32> to vector<16x32xf32>
    %151 = arith.subf %145, %150 : vector<16x32xf32>
    %152 = arith.mulf %151, %151 : vector<16x32xf32>
    %cst_49 = arith.constant dense<0.000000e+00> : vector<16xf32>
    %153 = vector.multi_reduction <add>, %152, %cst_49 [1] : vector<16x32xf32> to vector<16xf32>
    %154 = vector.shape_cast %153 : vector<16xf32> to vector<16x1xf32>
    %cst_50 = arith.constant 3.200000e+01 : f32
    %155 = vector.broadcast %cst_50 : f32 to vector<16x1xf32>
    %156 = arith.divf %154, %155 : vector<16x1xf32>
    %cst_51 = arith.constant 9.99999974E-6 : f32
    %157 = vector.broadcast %cst_51 : f32 to vector<16x1xf32>
    %158 = arith.addf %156, %157 : vector<16x1xf32>
    %159 = math.rsqrt %158 : vector<16x1xf32>
    %160 = vector.broadcast %159 : vector<16x1xf32> to vector<16x32xf32>
    %161 = arith.mulf %151, %160 : vector<16x32xf32>
    %162 = arith.truncf %161 : vector<16x32xf32> to vector<16x32xbf16>
    %c0_52 = arith.constant 0 : index
    %c0_53 = arith.constant 0 : index
    %163 = vector.load %arg6[%c0_52, %c0_53] : memref<32x128xbf16, #tpu.memory_space<vmem>>, vector<32x128xbf16>
    %cst_54 = arith.constant dense<0.000000e+00> : vector<16x128xf32>
    %164 = tpu.matmul %162, %163, %cst_54 {dimension_numbers = #tpu.dot_dimension_numbers<[1], [0], [0], [1], [0, 0, 1, 1], [], []>} : vector<16x32xbf16>, vector<32x128xbf16>, vector<16x128xf32> -> vector<16x128xf32>
    %c0_55 = arith.constant 0 : index
    %c0_56 = arith.constant 0 : index
    %165 = vector.load %arg7[%c0_55, %c0_56] : memref<1x128xf32, #tpu.memory_space<vmem>>, vector<1x128xf32>
    %166 = vector.shape_cast %165 : vector<1x128xf32> to vector<128xf32>
    %167 = vector.shape_cast %166 : vector<128xf32> to vector<1x128xf32>
    %168 = vector.broadcast %167 : vector<1x128xf32> to vector<16x128xf32>
    %169 = arith.addf %164, %168 : vector<16x128xf32>
    %cst_57 = arith.constant 0.000000e+00 : f32
    %170 = vector.broadcast %cst_57 : f32 to vector<16x128xf32>
    %171 = arith.maximumf %169, %170 : vector<16x128xf32>
    %172 = arith.truncf %171 : vector<16x128xf32> to vector<16x128xbf16>
    %c0_58 = arith.constant 0 : index
    %c0_59 = arith.constant 0 : index
    %173 = vector.load %arg8[%c0_58, %c0_59] : memref<128x32xbf16, #tpu.memory_space<vmem>>, vector<128x32xbf16>
    %cst_60 = arith.constant dense<0.000000e+00> : vector<16x32xf32>
    %174 = tpu.matmul %172, %173, %cst_60 {dimension_numbers = #tpu.dot_dimension_numbers<[1], [0], [0], [1], [0, 0, 1, 1], [], []>} : vector<16x128xbf16>, vector<128x32xbf16>, vector<16x32xf32> -> vector<16x32xf32>
    %c0_61 = arith.constant 0 : index
    %c0_62 = arith.constant 0 : index
    %175 = vector.load %arg9[%c0_61, %c0_62] : memref<1x32xf32, #tpu.memory_space<vmem>>, vector<1x32xf32>
    %176 = vector.shape_cast %175 : vector<1x32xf32> to vector<32xf32>
    %177 = vector.shape_cast %176 : vector<32xf32> to vector<1x32xf32>
    %178 = vector.broadcast %177 : vector<1x32xf32> to vector<16x32xf32>
    %179 = arith.addf %174, %178 : vector<16x32xf32>
    %180 = arith.addf %145, %179 : vector<16x32xf32>
    %181 = vector.shape_cast %180 : vector<16x32xf32> to vector<1x16x32xf32>
    %c0_63 = arith.constant 0 : index
    %c0_64 = arith.constant 0 : index
    %c0_65 = arith.constant 0 : index
    %182 = vector.load %arg10[%c0_63, %c0_64, %c0_65] : memref<1x16x32xf32, #tpu.memory_space<vmem>>, vector<1x16x32xf32>
    tpu.vector_store %arg10[%c0_63, %c0_64, %c0_65], %181 {strides = array<i32>} : memref<1x16x32xf32, #tpu.memory_space<vmem>>, vector<1x16x32xf32>,
    return
  }
  func.func @transform_0(%arg0: i32) -> (i32, i32, i32) {
    %c0_i32 = arith.constant 0 : i32
    %c0_i32_0 = arith.constant 0 : i32
    %c0_i32_1 = arith.constant 0 : i32
    return %arg0, %c0_i32, %c0_i32_0 : i32, i32, i32
  }
  func.func @transform_1(%arg0: i32) -> (i32, i32) {
    %c0_i32 = arith.constant 0 : i32
    %c0_i32_0 = arith.constant 0 : i32
    %c0_i32_1 = arith.constant 0 : i32
    return %c0_i32, %c0_i32_0 : i32, i32
  }
  func.func @transform_2(%arg0: i32) -> (i32, i32) {
    %c0_i32 = arith.constant 0 : i32
    %c0_i32_0 = arith.constant 0 : i32
    %c0_i32_1 = arith.constant 0 : i32
    return %c0_i32, %c0_i32_0 : i32, i32
  }
  func.func @transform_3(%arg0: i32) -> (i32, i32, i32) {
    %c0_i32 = arith.constant 0 : i32
    %c0_i32_0 = arith.constant 0 : i32
    %c0_i32_1 = arith.constant 0 : i32
    %c0_i32_2 = arith.constant 0 : i32
    return %c0_i32, %c0_i32_0, %c0_i32_1 : i32, i32, i32
  }
  func.func @transform_4(%arg0: i32) -> (i32, i32) {
    %c0_i32 = arith.constant 0 : i32
    %c0_i32_0 = arith.constant 0 : i32
    %c0_i32_1 = arith.constant 0 : i32
    return %c0_i32, %c0_i32_0 : i32, i32
  }
  func.func @transform_5(%arg0: i32) -> (i32, i32) {
    %c0_i32 = arith.constant 0 : i32
    %c0_i32_0 = arith.constant 0 : i32
    %c0_i32_1 = arith.constant 0 : i32
    return %c0_i32, %c0_i32_0 : i32, i32
  }
  func.func @transform_6(%arg0: i32) -> (i32, i32) {
    %c0_i32 = arith.constant 0 : i32
    %c0_i32_0 = arith.constant 0 : i32
    %c0_i32_1 = arith.constant 0 : i32
    return %c0_i32, %c0_i32_0 : i32, i32
  }
  func.func @transform_7(%arg0: i32) -> (i32, i32) {
    %c0_i32 = arith.constant 0 : i32
    %c0_i32_0 = arith.constant 0 : i32
    %c0_i32_1 = arith.constant 0 : i32
    return %c0_i32, %c0_i32_0 : i32, i32
  }
  func.func @transform_8(%arg0: i32) -> (i32, i32) {
    %c0_i32 = arith.constant 0 : i32
    %c0_i32_0 = arith.constant 0 : i32
    %c0_i32_1 = arith.constant 0 : i32
    return %c0_i32, %c0_i32_0 : i32, i32
  }
  func.func @transform_9(%arg0: i32) -> (i32, i32, i32) {
    %c0_i32 = arith.constant 0 : i32
    %c0_i32_0 = arith.constant 0 : i32
    %c0_i32_1 = arith.constant 0 : i32
    return %arg0, %c0_i32, %c0_i32_0 : i32, i32, i32
  }
}

module attributes {stable_mosaic.version = 11 : i64} {
  func.func @_block_kernel(%arg0: i32, %arg1: memref<1x16x32xf32, #tpu.memory_space<vmem>>, %arg2: memref<32x96xbf16, #tpu.memory_space<vmem>>, %arg3: memref<1x96xf32, #tpu.memory_space<vmem>>, %arg4: memref<4x8x32xbf16, #tpu.memory_space<vmem>>, %arg5: memref<1x32xf32, #tpu.memory_space<vmem>>, %arg6: memref<32x128xbf16, #tpu.memory_space<vmem>>, %arg7: memref<1x128xf32, #tpu.memory_space<vmem>>, %arg8: memref<128x32xbf16, #tpu.memory_space<vmem>>, %arg9: memref<1x32xf32, #tpu.memory_space<vmem>>, %arg10: memref<1x16x32xf32, #tpu.memory_space<vmem>>) attributes {dimension_semantics = [#tpu.dimension_semantics<parallel>], iteration_bounds = array<i64: 2>, scalar_prefetch = 0 : i64, scratch_operands = 0 : i64, tpu.core_type = #tpu.core_type<tc>, window_params = [{transform_indices = @transform_0, window_bounds = array<i64: 1, 16, 32>}, {pipeline_mode = #tpu.pipeline_mode<synchronous>, transform_indices = @transform_1, window_bounds = array<i64: 32, 96>}, {pipeline_mode = #tpu.pipeline_mode<synchronous>, transform_indices = @transform_2, window_bounds = array<i64: 1, 96>}, {pipeline_mode = #tpu.pipeline_mode<synchronous>, transform_indices = @transform_3, window_bounds = array<i64: 4, 8, 32>}, {pipeline_mode = #tpu.pipeline_mode<synchronous>, transform_indices = @transform_4, window_bounds = array<i64: 1, 32>}, {pipeline_mode = #tpu.pipeline_mode<synchronous>, transform_indices = @transform_5, window_bounds = array<i64: 32, 128>}, {pipeline_mode = #tpu.pipeline_mode<synchronous>, transform_indices = @transform_6, window_bounds = array<i64: 1, 128>}, {pipeline_mode = #tpu.pipeline_mode<synchronous>, transform_indices = @transform_7, window_bounds = array<i64: 128, 32>}, {pipeline_mode = #tpu.pipeline_mode<synchronous>, transform_indices = @transform_8, window_bounds = array<i64: 1, 32>}, {transform_indices = @transform_9, window_bounds = array<i64: 1, 16, 32>}]} {
    %c0 = arith.constant 0 : index
    %c0_0 = arith.constant 0 : index
    %c0_1 = arith.constant 0 : index
    %0 = vector.load %arg1[%c0, %c0_0, %c0_1] : memref<1x16x32xf32, #tpu.memory_space<vmem>>, vector<1x16x32xf32>
    %1 = vector.shape_cast %0 : vector<1x16x32xf32> to vector<16x32xf32>
    %cst = arith.constant dense<0.000000e+00> : vector<16xf32>
    %2 = vector.multi_reduction <add>, %1, %cst [1] : vector<16x32xf32> to vector<16xf32>
    %3 = vector.shape_cast %2 : vector<16xf32> to vector<16x1xf32>
    %cst_2 = arith.constant 3.200000e+01 : f32
    %4 = vector.broadcast %cst_2 : f32 to vector<16x1xf32>
    %5 = arith.divf %3, %4 : vector<16x1xf32>
    %6 = vector.broadcast %5 : vector<16x1xf32> to vector<16x32xf32>
    %7 = arith.subf %1, %6 : vector<16x32xf32>
    %8 = arith.mulf %7, %7 : vector<16x32xf32>
    %cst_3 = arith.constant dense<0.000000e+00> : vector<16xf32>
    %9 = vector.multi_reduction <add>, %8, %cst_3 [1] : vector<16x32xf32> to vector<16xf32>
    %10 = vector.shape_cast %9 : vector<16xf32> to vector<16x1xf32>
    %cst_4 = arith.constant 3.200000e+01 : f32
    %11 = vector.broadcast %cst_4 : f32 to vector<16x1xf32>
    %12 = arith.divf %10, %11 : vector<16x1xf32>
    %cst_5 = arith.constant 9.99999974E-6 : f32
    %13 = vector.broadcast %cst_5 : f32 to vector<16x1xf32>
    %14 = arith.addf %12, %13 : vector<16x1xf32>
    %15 = math.rsqrt %14 : vector<16x1xf32>
    %16 = vector.broadcast %15 : vector<16x1xf32> to vector<16x32xf32>
    %17 = arith.mulf %7, %16 : vector<16x32xf32>
    %18 = arith.truncf %17 : vector<16x32xf32> to vector<16x32xbf16>
    %c0_6 = arith.constant 0 : index
    %c0_7 = arith.constant 0 : index
    %19 = vector.load %arg2[%c0_6, %c0_7] : memref<32x96xbf16, #tpu.memory_space<vmem>>, vector<32x96xbf16>
    %cst_8 = arith.constant dense<0.000000e+00> : vector<16x96xf32>
    %20 = tpu.matmul %18, %19, %cst_8 {dimension_numbers = #tpu.dot_dimension_numbers<[1], [0], [0], [1], [0, 0, 1, 1], [], []>} : vector<16x32xbf16>, vector<32x96xbf16>, vector<16x96xf32> -> vector<16x96xf32>
    %c0_9 = arith.constant 0 : index
    %c0_10 = arith.constant 0 : index
    %21 = vector.load %arg3[%c0_9, %c0_10] : memref<1x96xf32, #tpu.memory_space<vmem>>, vector<1x96xf32>
    %22 = vector.shape_cast %21 : vector<1x96xf32> to vector<96xf32>
    %23 = vector.shape_cast %22 : vector<96xf32> to vector<1x96xf32>
    %24 = vector.broadcast %23 : vector<1x96xf32> to vector<16x96xf32>
    %25 = arith.addf %20, %24 : vector<16x96xf32>
    %26 = arith.truncf %25 : vector<16x96xf32> to vector<16x96xbf16>
    %27 = tpu.iota {dimensions = array<i32: 0>} : vector<16x16xi32>
    %28 = tpu.iota {dimensions = array<i32: 1>} : vector<16x16xi32>
    %29 = arith.cmpi sge, %27, %28 : vector<16x16xi32>
    %30 = vector.shape_cast %29 : vector<16x16xi1> to vector<1x16x16xi1>
    %cst_11 = arith.constant 0.000000e+00 : f32
    %31 = vector.broadcast %cst_11 : f32 to vector<16x32xf32>
    %32 = vector.extract_strided_slice %26 {offsets = [0, 0], sizes = [16, 8], strides = [1, 1]} : vector<16x96xbf16> to vector<16x8xbf16>
    %33 = vector.shape_cast %32 : vector<16x8xbf16> to vector<1x16x8xbf16>
    %34 = vector.extract_strided_slice %26 {offsets = [0, 32], sizes = [16, 8], strides = [1, 1]} : vector<16x96xbf16> to vector<16x8xbf16>
    %35 = vector.shape_cast %34 : vector<16x8xbf16> to vector<1x16x8xbf16>
    %36 = vector.extract_strided_slice %26 {offsets = [0, 64], sizes = [16, 8], strides = [1, 1]} : vector<16x96xbf16> to vector<16x8xbf16>
    %37 = vector.shape_cast %36 : vector<16x8xbf16> to vector<1x16x8xbf16>
    "tpu.trace_start"() <{level = 10 : i32, message = "btd,bud->btu"}> : () -> ()
    %cst_12 = arith.constant dense<0.000000e+00> : vector<1x16x16xf32>
    %38 = tpu.matmul %33, %35, %cst_12 {dimension_numbers = #tpu.dot_dimension_numbers<[2], [2], [1], [1], [0, 0, 0, 1, 1, 1], [0], [0]>} : vector<1x16x8xbf16>, vector<1x16x8xbf16>, vector<1x16x16xf32> -> vector<1x16x16xf32>
    %cst_13 = arith.constant -1.000000e+30 : f32
    "tpu.trace_stop"() : () -> ()
    %39 = vector.broadcast %cst_13 : f32 to vector<1x16x16xf32>
    %40 = arith.select %30, %38, %39 : vector<1x16x16xi1>, vector<1x16x16xf32>
    %cst_14 = arith.constant dense<0xFF800000> : vector<1x16xf32>
    %41 = vector.multi_reduction <maximumf>, %40, %cst_14 [2] : vector<1x16x16xf32> to vector<1x16xf32>
    %42 = vector.shape_cast %41 : vector<1x16xf32> to vector<1x16x1xf32>
    %43 = vector.broadcast %42 : vector<1x16x1xf32> to vector<1x16x16xf32>
    %44 = arith.subf %40, %43 : vector<1x16x16xf32>
    %45 = math.exp %44 : vector<1x16x16xf32>
    %cst_15 = arith.constant dense<0.000000e+00> : vector<1x16xf32>
    %46 = vector.multi_reduction <add>, %45, %cst_15 [2] : vector<1x16x16xf32> to vector<1x16xf32>
    %47 = vector.shape_cast %46 : vector<1x16xf32> to vector<1x16x1xf32>
    %48 = arith.truncf %45 : vector<1x16x16xf32> to vector<1x16x16xbf16>
    "tpu.trace_start"() <{level = 10 : i32, message = "btu,bud->btd"}> : () -> ()
    %cst_16 = arith.constant dense<0.000000e+00> : vector<1x16x8xf32>
    %49 = tpu.matmul %48, %37, %cst_16 {dimension_numbers = #tpu.dot_dimension_numbers<[2], [1], [1], [2], [0, 0, 0, 1, 1, 2], [0], [0]>} : vector<1x16x16xbf16>, vector<1x16x8xbf16>, vector<1x16x8xf32> -> vector<1x16x8xf32>
    "tpu.trace_stop"() : () -> ()
    %50 = tpu.reciprocal %47 {approx = true} : vector<1x16x1xf32> -> vector<1x16x1xf32>
    %51 = vector.broadcast %50 : vector<1x16x1xf32> to vector<1x16x8xf32>
    %52 = arith.mulf %49, %51 : vector<1x16x8xf32>
    %53 = vector.shape_cast %52 : vector<1x16x8xf32> to vector<16x8xf32>
    %54 = arith.truncf %53 : vector<16x8xf32> to vector<16x8xbf16>
    %c0_17 = arith.constant 0 : index
    %c0_18 = arith.constant 0 : index
    %c0_19 = arith.constant 0 : index
    %55 = vector.load %arg4[%c0_17, %c0_18, %c0_19] : memref<4x8x32xbf16, #tpu.memory_space<vmem>>, vector<1x8x32xbf16>
    %56 = vector.shape_cast %55 : vector<1x8x32xbf16> to vector<8x32xbf16>
    %cst_20 = arith.constant dense<0.000000e+00> : vector<16x32xf32>
    %57 = tpu.matmul %54, %56, %cst_20 {dimension_numbers = #tpu.dot_dimension_numbers<[1], [0], [0], [1], [0, 0, 1, 1], [], []>} : vector<16x8xbf16>, vector<8x32xbf16>, vector<16x32xf32> -> vector<16x32xf32>
    %58 = arith.addf %31, %57 : vector<16x32xf32>
    %59 = vector.extract_strided_slice %26 {offsets = [0, 8], sizes = [16, 8], strides = [1, 1]} : vector<16x96xbf16> to vector<16x8xbf16>
    %60 = vector.shape_cast %59 : vector<16x8xbf16> to vector<1x16x8xbf16>
    %61 = vector.extract_strided_slice %26 {offsets = [0, 40], sizes = [16, 8], strides = [1, 1]} : vector<16x96xbf16> to vector<16x8xbf16>
    %62 = vector.shape_cast %61 : vector<16x8xbf16> to vector<1x16x8xbf16>
    %63 = vector.extract_strided_slice %26 {offsets = [0, 72], sizes = [16, 8], strides = [1, 1]} : vector<16x96xbf16> to vector<16x8xbf16>
    %64 = vector.shape_cast %63 : vector<16x8xbf16> to vector<1x16x8xbf16>
    "tpu.trace_start"() <{level = 10 : i32, message = "btd,bud->btu"}> : () -> ()
    %cst_21 = arith.constant dense<0.000000e+00> : vector<1x16x16xf32>
    %65 = tpu.matmul %60, %62, %cst_21 {dimension_numbers = #tpu.dot_dimension_numbers<[2], [2], [1], [1], [0, 0, 0, 1, 1, 1], [0], [0]>} : vector<1x16x8xbf16>, vector<1x16x8xbf16>, vector<1x16x16xf32> -> vector<1x16x16xf32>
    %cst_22 = arith.constant -1.000000e+30 : f32
    "tpu.trace_stop"() : () -> ()
    %66 = vector.broadcast %cst_22 : f32 to vector<1x16x16xf32>
    %67 = arith.select %30, %65, %66 : vector<1x16x16xi1>, vector<1x16x16xf32>
    %cst_23 = arith.constant dense<0xFF800000> : vector<1x16xf32>
    %68 = vector.multi_reduction <maximumf>, %67, %cst_23 [2] : vector<1x16x16xf32> to vector<1x16xf32>
    %69 = vector.shape_cast %68 : vector<1x16xf32> to vector<1x16x1xf32>
    %70 = vector.broadcast %69 : vector<1x16x1xf32> to vector<1x16x16xf32>
    %71 = arith.subf %67, %70 : vector<1x16x16xf32>
    %72 = math.exp %71 : vector<1x16x16xf32>
    %cst_24 = arith.constant dense<0.000000e+00> : vector<1x16xf32>
    %73 = vector.multi_reduction <add>, %72, %cst_24 [2] : vector<1x16x16xf32> to vector<1x16xf32>
    %74 = vector.shape_cast %73 : vector<1x16xf32> to vector<1x16x1xf32>
    %75 = arith.truncf %72 : vector<1x16x16xf32> to vector<1x16x16xbf16>
    "tpu.trace_start"() <{level = 10 : i32, message = "btu,bud->btd"}> : () -> ()
    %cst_25 = arith.constant dense<0.000000e+00> : vector<1x16x8xf32>
    %76 = tpu.matmul %75, %64, %cst_25 {dimension_numbers = #tpu.dot_dimension_numbers<[2], [1], [1], [2], [0, 0, 0, 1, 1, 2], [0], [0]>} : vector<1x16x16xbf16>, vector<1x16x8xbf16>, vector<1x16x8xf32> -> vector<1x16x8xf32>
    "tpu.trace_stop"() : () -> ()
    %77 = tpu.reciprocal %74 {approx = true} : vector<1x16x1xf32> -> vector<1x16x1xf32>
    %78 = vector.broadcast %77 : vector<1x16x1xf32> to vector<1x16x8xf32>
    %79 = arith.mulf %76, %78 : vector<1x16x8xf32>
    %80 = vector.shape_cast %79 : vector<1x16x8xf32> to vector<16x8xf32>
    %81 = arith.truncf %80 : vector<16x8xf32> to vector<16x8xbf16>
    %c1 = arith.constant 1 : index
    %c0_26 = arith.constant 0 : index
    %c0_27 = arith.constant 0 : index
    %82 = vector.load %arg4[%c1, %c0_26, %c0_27] : memref<4x8x32xbf16, #tpu.memory_space<vmem>>, vector<1x8x32xbf16>
    %83 = vector.shape_cast %82 : vector<1x8x32xbf16> to vector<8x32xbf16>
    %cst_28 = arith.constant dense<0.000000e+00> : vector<16x32xf32>
    %84 = tpu.matmul %81, %83, %cst_28 {dimension_numbers = #tpu.dot_dimension_numbers<[1], [0], [0], [1], [0, 0, 1, 1], [], []>} : vector<16x8xbf16>, vector<8x32xbf16>, vector<16x32xf32> -> vector<16x32xf32>
    %85 = arith.addf %58, %84 : vector<16x32xf32>
    %86 = vector.extract_strided_slice %26 {offsets = [0, 16], sizes = [16, 8], strides = [1, 1]} : vector<16x96xbf16> to vector<16x8xbf16>
    %87 = vector.shape_cast %86 : vector<16x8xbf16> to vector<1x16x8xbf16>
    %88 = vector.extract_strided_slice %26 {offsets = [0, 48], sizes = [16, 8], strides = [1, 1]} : vector<16x96xbf16> to vector<16x8xbf16>
    %89 = vector.shape_cast %88 : vector<16x8xbf16> to vector<1x16x8xbf16>
    %90 = vector.extract_strided_slice %26 {offsets = [0, 80], sizes = [16, 8], strides = [1, 1]} : vector<16x96xbf16> to vector<16x8xbf16>
    %91 = vector.shape_cast %90 : vector<16x8xbf16> to vector<1x16x8xbf16>
    "tpu.trace_start"() <{level = 10 : i32, message = "btd,bud->btu"}> : () -> ()
    %cst_29 = arith.constant dense<0.000000e+00> : vector<1x16x16xf32>
    %92 = tpu.matmul %87, %89, %cst_29 {dimension_numbers = #tpu.dot_dimension_numbers<[2], [2], [1], [1], [0, 0, 0, 1, 1, 1], [0], [0]>} : vector<1x16x8xbf16>, vector<1x16x8xbf16>, vector<1x16x16xf32> -> vector<1x16x16xf32>
    %cst_30 = arith.constant -1.000000e+30 : f32
    "tpu.trace_stop"() : () -> ()
    %93 = vector.broadcast %cst_30 : f32 to vector<1x16x16xf32>
    %94 = arith.select %30, %92, %93 : vector<1x16x16xi1>, vector<1x16x16xf32>
    %cst_31 = arith.constant dense<0xFF800000> : vector<1x16xf32>
    %95 = vector.multi_reduction <maximumf>, %94, %cst_31 [2] : vector<1x16x16xf32> to vector<1x16xf32>
    %96 = vector.shape_cast %95 : vector<1x16xf32> to vector<1x16x1xf32>
    %97 = vector.broadcast %96 : vector<1x16x1xf32> to vector<1x16x16xf32>
    %98 = arith.subf %94, %97 : vector<1x16x16xf32>
    %99 = math.exp %98 : vector<1x16x16xf32>
    %cst_32 = arith.constant dense<0.000000e+00> : vector<1x16xf32>
    %100 = vector.multi_reduction <add>, %99, %cst_32 [2] : vector<1x16x16xf32> to vector<1x16xf32>
    %101 = vector.shape_cast %100 : vector<1x16xf32> to vector<1x16x1xf32>
    %102 = arith.truncf %99 : vector<1x16x16xf32> to vector<1x16x16xbf16>
    "tpu.trace_start"() <{level = 10 : i32, message = "btu,bud->btd"}> : () -> ()
    %cst_33 = arith.constant dense<0.000000e+00> : vector<1x16x8xf32>
    %103 = tpu.matmul %102, %91, %cst_33 {dimension_numbers = #tpu.dot_dimension_numbers<[2], [1], [1], [2], [0, 0, 0, 1, 1, 2], [0], [0]>} : vector<1x16x16xbf16>, vector<1x16x8xbf16>, vector<1x16x8xf32> -> vector<1x16x8xf32>
    "tpu.trace_stop"() : () -> ()
    %104 = tpu.reciprocal %101 {approx = true} : vector<1x16x1xf32> -> vector<1x16x1xf32>
    %105 = vector.broadcast %104 : vector<1x16x1xf32> to vector<1x16x8xf32>
    %106 = arith.mulf %103, %105 : vector<1x16x8xf32>
    %107 = vector.shape_cast %106 : vector<1x16x8xf32> to vector<16x8xf32>
    %108 = arith.truncf %107 : vector<16x8xf32> to vector<16x8xbf16>
    %c2 = arith.constant 2 : index
    %c0_34 = arith.constant 0 : index
    %c0_35 = arith.constant 0 : index
    %109 = vector.load %arg4[%c2, %c0_34, %c0_35] : memref<4x8x32xbf16, #tpu.memory_space<vmem>>, vector<1x8x32xbf16>
    %110 = vector.shape_cast %109 : vector<1x8x32xbf16> to vector<8x32xbf16>
    %cst_36 = arith.constant dense<0.000000e+00> : vector<16x32xf32>
    %111 = tpu.matmul %108, %110, %cst_36 {dimension_numbers = #tpu.dot_dimension_numbers<[1], [0], [0], [1], [0, 0, 1, 1], [], []>} : vector<16x8xbf16>, vector<8x32xbf16>, vector<16x32xf32> -> vector<16x32xf32>
    %112 = arith.addf %85, %111 : vector<16x32xf32>
    %113 = vector.extract_strided_slice %26 {offsets = [0, 24], sizes = [16, 8], strides = [1, 1]} : vector<16x96xbf16> to vector<16x8xbf16>
    %114 = vector.shape_cast %113 : vector<16x8xbf16> to vector<1x16x8xbf16>
    %115 = vector.extract_strided_slice %26 {offsets = [0, 56], sizes = [16, 8], strides = [1, 1]} : vector<16x96xbf16> to vector<16x8xbf16>
    %116 = vector.shape_cast %115 : vector<16x8xbf16> to vector<1x16x8xbf16>
    %117 = vector.extract_strided_slice %26 {offsets = [0, 88], sizes = [16, 8], strides = [1, 1]} : vector<16x96xbf16> to vector<16x8xbf16>
    %118 = vector.shape_cast %117 : vector<16x8xbf16> to vector<1x16x8xbf16>
    "tpu.trace_start"() <{level = 10 : i32, message = "btd,bud->btu"}> : () -> ()
    %cst_37 = arith.constant dense<0.000000e+00> : vector<1x16x16xf32>
    %119 = tpu.matmul %114, %116, %cst_37 {dimension_numbers = #tpu.dot_dimension_numbers<[2], [2], [1], [1], [0, 0, 0, 1, 1, 1], [0], [0]>} : vector<1x16x8xbf16>, vector<1x16x8xbf16>, vector<1x16x16xf32> -> vector<1x16x16xf32>
    %cst_38 = arith.constant -1.000000e+30 : f32
    "tpu.trace_stop"() : () -> ()
    %120 = vector.broadcast %cst_38 : f32 to vector<1x16x16xf32>
    %121 = arith.select %30, %119, %120 : vector<1x16x16xi1>, vector<1x16x16xf32>
    %cst_39 = arith.constant dense<0xFF800000> : vector<1x16xf32>
    %122 = vector.multi_reduction <maximumf>, %121, %cst_39 [2] : vector<1x16x16xf32> to vector<1x16xf32>
    %123 = vector.shape_cast %122 : vector<1x16xf32> to vector<1x16x1xf32>
    %124 = vector.broadcast %123 : vector<1x16x1xf32> to vector<1x16x16xf32>
    %125 = arith.subf %121, %124 : vector<1x16x16xf32>
    %126 = math.exp %125 : vector<1x16x16xf32>
    %cst_40 = arith.constant dense<0.000000e+00> : vector<1x16xf32>
    %127 = vector.multi_reduction <add>, %126, %cst_40 [2] : vector<1x16x16xf32> to vector<1x16xf32>
    %128 = vector.shape_cast %127 : vector<1x16xf32> to vector<1x16x1xf32>
    %129 = arith.truncf %126 : vector<1x16x16xf32> to vector<1x16x16xbf16>
    "tpu.trace_start"() <{level = 10 : i32, message = "btu,bud->btd"}> : () -> ()
    %cst_41 = arith.constant dense<0.000000e+00> : vector<1x16x8xf32>
    %130 = tpu.matmul %129, %118, %cst_41 {dimension_numbers = #tpu.dot_dimension_numbers<[2], [1], [1], [2], [0, 0, 0, 1, 1, 2], [0], [0]>} : vector<1x16x16xbf16>, vector<1x16x8xbf16>, vector<1x16x8xf32> -> vector<1x16x8xf32>
    "tpu.trace_stop"() : () -> ()
    %131 = tpu.reciprocal %128 {approx = true} : vector<1x16x1xf32> -> vector<1x16x1xf32>
    %132 = vector.broadcast %131 : vector<1x16x1xf32> to vector<1x16x8xf32>
    %133 = arith.mulf %130, %132 : vector<1x16x8xf32>
    %134 = vector.shape_cast %133 : vector<1x16x8xf32> to vector<16x8xf32>
    %135 = arith.truncf %134 : vector<16x8xf32> to vector<16x8xbf16>
    %c3 = arith.constant 3 : index
    %c0_42 = arith.constant 0 : index
    %c0_43 = arith.constant 0 : index
    %136 = vector.load %arg4[%c3, %c0_42, %c0_43] : memref<4x8x32xbf16, #tpu.memory_space<vmem>>, vector<1x8x32xbf16>
    %137 = vector.shape_cast %136 : vector<1x8x32xbf16> to vector<8x32xbf16>
    %cst_44 = arith.constant dense<0.000000e+00> : vector<16x32xf32>
    %138 = tpu.matmul %135, %137, %cst_44 {dimension_numbers = #tpu.dot_dimension_numbers<[1], [0], [0], [1], [0, 0, 1, 1], [], []>} : vector<16x8xbf16>, vector<8x32xbf16>, vector<16x32xf32> -> vector<16x32xf32>
    %139 = arith.addf %112, %138 : vector<16x32xf32>
    %140 = arith.addf %1, %139 : vector<16x32xf32>
    %c0_45 = arith.constant 0 : index
    %c0_46 = arith.constant 0 : index
    %141 = vector.load %arg5[%c0_45, %c0_46] : memref<1x32xf32, #tpu.memory_space<vmem>>, vector<1x32xf32>
    %142 = vector.shape_cast %141 : vector<1x32xf32> to vector<32xf32>
    %143 = vector.shape_cast %142 : vector<32xf32> to vector<1x32xf32>
    %144 = vector.broadcast %143 : vector<1x32xf32> to vector<16x32xf32>
    %145 = arith.addf %140, %144 : vector<16x32xf32>
    %cst_47 = arith.constant dense<0.000000e+00> : vector<16xf32>
    %146 = vector.multi_reduction <add>, %145, %cst_47 [1] : vector<16x32xf32> to vector<16xf32>
    %147 = vector.shape_cast %146 : vector<16xf32> to vector<16x1xf32>
    %cst_48 = arith.constant 3.200000e+01 : f32
    %148 = vector.broadcast %cst_48 : f32 to vector<16x1xf32>
    %149 = arith.divf %147, %148 : vector<16x1xf32>
    %150 = vector.broadcast %149 : vector<16x1xf32> to vector<16x32xf32>
    %151 = arith.subf %145, %150 : vector<16x32xf32>
    %152 = arith.mulf %151, %151 : vector<16x32xf32>
    %cst_49 = arith.constant dense<0.000000e+00> : vector<16xf32>
    %153 = vector.multi_reduction <add>, %152, %cst_49 [1] : vector<16x32xf32> to vector<16xf32>
    %154 = vector.shape_cast %153 : vector<16xf32> to vector<16x1xf32>
    %cst_50 = arith.constant 3.200000e+01 : f32
    %155 = vector.broadcast %cst_50 : f32 to vector<16x1xf32>
    %156 = arith.divf %154, %155 : vector<16x1xf32>
    %cst_51 = arith.constant 9.99999974E-6 : f32
    %157 = vector.broadcast %cst_51 : f32 to vector<16x1xf32>
    %158 = arith.addf %156, %157 : vector<16x1xf32>
    %159 = math.rsqrt %158 : vector<16x1xf32>
    %160 = vector.broadcast %159 : vector<16x1xf32> to vector<16x32xf32>
    %161 = arith.mulf %151, %160 : vector<16x32xf32>
    %162 = arith.truncf %161 : vector<16x32xf32> to vector<16x32xbf16>
    %c0_52 = arith.constant 0 : index
    %c0_53 = arith.constant 0 : index
    %163 = vector.load %arg6[%c0_52, %c0_53] : memref<32x128xbf16, #tpu.memory_space<vmem>>, vector<32x128xbf16>
    %cst_54 = arith.constant dense<0.000000e+00> : vector<16x128xf32>
    %164 = tpu.matmul %162, %163, %cst_54 {dimension_numbers = #tpu.dot_dimension_numbers<[1], [0], [0], [1], [0, 0, 1, 1], [], []>} : vector<16x32xbf16>, vector<32x128xbf16>, vector<16x128xf32> -> vector<16x128xf32>
    %c0_55 = arith.constant 0 : index
    %c0_56 = arith.constant 0 : index
    %165 = vector.load %arg7[%c0_55, %c0_56] : memref<1x128xf32, #tpu.memory_space<vmem>>, vector<1x128xf32>
    %166 = vector.shape_cast %165 : vector<1x128xf32> to vector<128xf32>
    %167 = vector.shape_cast %166 : vector<128xf32> to vector<1x128xf32>
    %168 = vector.broadcast %167 : vector<1x128xf32> to vector<16x128xf32>
    %169 = arith.addf %164, %168 : vector<16x128xf32>
    %cst_57 = arith.constant 0.000000e+00 : f32
    %170 = vector.broadcast %cst_57 : f32 to vector<16x128xf32>
    %171 = arith.maximumf %169, %170 : vector<16x128xf32>
    %172 = arith.truncf %171 : vector<16x128xf32> to vector<16x128xbf16>
    %c0_58 = arith.constant 0 : index
    %c0_59 = arith.constant 0 : index
    %173 = vector.load %arg8[%c0_58, %c0_59] : memref<128x32xbf16, #tpu.memory_space<vmem>>, vector<128x32xbf16>
    %cst_60 = arith.constant dense<0.000000e+00> : vector<16x32xf32>
    %174 = tpu.matmul %172, %173, %cst_60 {dimension_numbers = #tpu.dot_dimension_numbers<[1], [0], [0], [1], [0, 0, 1, 1], [], []>} : vector<16x128xbf16>, vector<128x32xbf16>, vector<16x32xf32> -> vector<16x32xf32>
    %c0_61 = arith.constant 0 : index
    %c0_62 = arith.constant 0 : index
    %175 = vector.load %arg9[%c0_61, %c0_62] : memref<1x32xf32, #tpu.memory_space<vmem>>, vector<1x32xf32>
    %176 = vector.shape_cast %175 : vector<1x32xf32> to vector<32xf32>
    %177 = vector.shape_cast %176 : vector<32xf32> to vector<1x32xf32>
    %178 = vector.broadcast %177 : vector<1x32xf32> to vector<16x32xf32>
    %179 = arith.addf %174, %178 : vector<16x32xf32>
    %180 = arith.addf %145, %179 : vector<16x32xf32>
    %181 = vector.shape_cast %180 : vector<16x32xf32> to vector<1x16x32xf32>
    %c0_63 = arith.constant 0 : index
    %c0_64 = arith.constant 0 : index
    %c0_65 = arith.constant 0 : index
    %182 = vector.load %arg10[%c0_63, %c0_64, %c0_65] : memref<1x16x32xf32, #tpu.memory_space<vmem>>, vector<1x16x32xf32>
    tpu.vector_store %arg10[%c0_63, %c0_64, %c0_65], %181 {strides = array<i32>} : memref<1x16x32xf32, #tpu.memory_space<vmem>>, vector<1x16x32xf32>,
    return
  }
  func.func @transform_0(%arg0: i32) -> (i32, i32, i32) {
    %c0_i32 = arith.constant 0 : i32
    %c0_i32_0 = arith.constant 0 : i32
    %c0_i32_1 = arith.constant 0 : i32
    return %arg0, %c0_i32, %c0_i32_0 : i32, i32, i32
  }
  func.func @transform_1(%arg0: i32) -> (i32, i32) {
    %c0_i32 = arith.constant 0 : i32
    %c0_i32_0 = arith.constant 0 : i32
    %c0_i32_1 = arith.constant 0 : i32
    return %c0_i32, %c0_i32_0 : i32, i32
  }
  func.func @transform_2(%arg0: i32) -> (i32, i32) {
    %c0_i32 = arith.constant 0 : i32
    %c0_i32_0 = arith.constant 0 : i32
    %c0_i32_1 = arith.constant 0 : i32
    return %c0_i32, %c0_i32_0 : i32, i32
  }
  func.func @transform_3(%arg0: i32) -> (i32, i32, i32) {
    %c0_i32 = arith.constant 0 : i32
    %c0_i32_0 = arith.constant 0 : i32
    %c0_i32_1 = arith.constant 0 : i32
    %c0_i32_2 = arith.constant 0 : i32
    return %c0_i32, %c0_i32_0, %c0_i32_1 : i32, i32, i32
  }
  func.func @transform_4(%arg0: i32) -> (i32, i32) {
    %c0_i32 = arith.constant 0 : i32
    %c0_i32_0 = arith.constant 0 : i32
    %c0_i32_1 = arith.constant 0 : i32
    return %c0_i32, %c0_i32_0 : i32, i32
  }
  func.func @transform_5(%arg0: i32) -> (i32, i32) {
    %c0_i32 = arith.constant 0 : i32
    %c0_i32_0 = arith.constant 0 : i32
    %c0_i32_1 = arith.constant 0 : i32
    return %c0_i32, %c0_i32_0 : i32, i32
  }
  func.func @transform_6(%arg0: i32) -> (i32, i32) {
    %c0_i32 = arith.constant 0 : i32
    %c0_i32_0 = arith.constant 0 : i32
    %c0_i32_1 = arith.constant 0 : i32
    return %c0_i32, %c0_i32_0 : i32, i32
  }
  func.func @transform_7(%arg0: i32) -> (i32, i32) {
    %c0_i32 = arith.constant 0 : i32
    %c0_i32_0 = arith.constant 0 : i32
    %c0_i32_1 = arith.constant 0 : i32
    return %c0_i32, %c0_i32_0 : i32, i32
  }
  func.func @transform_8(%arg0: i32) -> (i32, i32) {
    %c0_i32 = arith.constant 0 : i32
    %c0_i32_0 = arith.constant 0 : i32
    %c0_i32_1 = arith.constant 0 : i32
    return %c0_i32, %c0_i32_0 : i32, i32
  }
  func.func @transform_9(%arg0: i32) -> (i32, i32, i32) {
    %c0_i32 = arith.constant 0 : i32
    %c0_i32_0 = arith.constant 0 : i32
    %c0_i32_1 = arith.constant 0 : i32
    return %arg0, %c0_i32, %c0_i32_0 : i32, i32, i32
  }
}

</mosaic_0001>

<bundles_post_ra>
// kernel: tpu_custom_call.1
= control target key start
LH: loop header
LB: loop body
LE: loop exit
PB: predicated region body
PF: predicated region fallthrough
CT: control target
= control target key end

     0   :  { %14 = vsyncpa [#allocation3], 0  ;;  %s1691_s0 = inlined_call_operand.vmem [shape: f32[2,16,32], index: 0, kind: input, shape index: {}]   ;;  %s1692_s1 = inlined_call_operand.vmem [shape: bf16[32,96], index: 1, kind: input, shape index: {}]   ;;  %s1693_s2 = inlined_call_operand.vmem [shape: f32[1,96], index: 2, kind: input, shape index: {}]   ;;  %s1694_s3 = inlined_call_operand.vmem [shape: bf16[4,8,32], index: 3, kind: input, shape index: {}]   ;;  %s1695_s4 = inlined_call_operand.vmem [shape: f32[1,32], index: 4, kind: input, shape index: {}]   ;;  %s1696_s5 = inlined_call_operand.vmem [shape: bf16[32,128], index: 5, kind: input, shape index: {}]   ;;  %s1697_s6 = inlined_call_operand.vmem [shape: f32[1,128], index: 6, kind: input, shape index: {}]   ;;  %s1698_s7 = inlined_call_operand.vmem [shape: bf16[128,32], index: 7, kind: input, shape index: {}]   ;;  %s1699_s8 = inlined_call_operand.vmem [shape: f32[1,32], index: 8, kind: input, shape index: {}]   ;;  %s1700_s9 = inlined_call_operand.hbm [shape: f32[2,16,32], index: 9, kind: output, shape index: {}]  }
   0x1   :  { %16 = vsyncpa [#allocation3 + $0x1], 0  ;;  %s1409_s30 = smov 0   ;;  %s1411_s10 = smov 0  }
   0x2   :  { %s1413_s11 = smov 0   ;;  %s1415_s12 = smov 0  }
   0x3 LB: > { %s1430_s13 = sadd.s32 4294967295, %s1343_s12   ;;  %s1091_s14 = sadd.s32 4294967294, %s1343_s12   ;;  %s1343_s12 = sphi %s1415_s12, %s1706_s12   ;;  %s1339_s11 = sphi %s1413_s11, %s1705_s11   ;;  %s1335_s10 = sphi %s1411_s10, %s1704_s10   ;;  %s1331_s30 = sphi %s1409_s30, %s1703_s30  }
   0x4   : > { %s1434_s15 = sadd.s32 1, %s1343_s12   ;;  %s223_s16 = sadd.s32 1, %s1339_s11 }
   0x5   : > { %s220_s17 = ssub.s32 %s1343_s12, %s1434_s15  ;;  %p233_p0 = scmp.ne.s32.totalorder %s1339_s11, %s1335_s10 }
   0x6   : > { %p221_p1 = scmp.eq.s32.totalorder %s220_s17, 0  ;;  %p234_p2 = scmp.eq.s32.totalorder %s1430_s13, 1 }
   0x7   : > { %p239_p3 = scmp.ne.s32.totalorder %s1335_s10, %s1331_s30  ;;  %p240_p4 = scmp.eq.s32.totalorder %s1091_s14, 1 }
   0x8   : > { %s1445_s18 = scalar_select %p221_p1, %s1339_s11, %s223_s16  }
   0x9   : > { %p1447_p5 = por %p234_p2, %p233_p0  ;;  %p1451_p6 = por %p240_p4, %p239_p3 }
   0xa   : > { %p1094_p7 = scmp.ge.s32.totalorder %s1343_s12, 1  ;;  %p290_p8 = scmp.lt.s32.totalorder %s1343_s12, 3 }
   0xc   : > { %p291_p9 = pnand %p1094_p7, %p290_p8 }
   0xd   : > { %p326_p10 = scmp.lt.s32.totalorder (!%p291_p9), %s1430_s13, 1  ;;  %s1346_s17 = smov (!%p291_p9), 64  }
   0xe   : > { %294 = sbr.rel (%p291_p9) target bundleno = 2087 (0x827), region = 56  ;;  %s1349_s23 = smov (!%p291_p9), 80  }
   0xf   : > { %s1350_s24 = smov (!%p291_p9), 112   ;;  %s1352_s26 = smov (!%p291_p9), 88  }
  0x10   : > { %s1353_s29 = smov (!%p291_p9), 104   ;;  %s1354_s14 = smov (!%p291_p9), 56  }
  0x11   : > { %s1355_s16 = smov (!%p291_p9), 40   ;;  %s323_s27 = sand.u32 (!%p291_p9), 1, %s1335_s10  }
  0x13   : > { %s327_s21 = scalar_select %p326_p10, %s1430_s13, 1  ;;  %vm334_vm0 = vcmask 261120   ;;  %v1345_v4 = vmov 32.0   ;;  %v1170_v21 = vld [vmem:[%s1692_s1 + $0x8] sm:$0xff]  ;;  %v1169_v22 = vld [vmem:[%s1692_s1] sm:$0xff]  ;;  %vm440_vm8 = vcmask 64512   ;;  %v426_v59 = vlaneseq }
  0x14   : > { %1239 = vrcp.f32 %v1345_v4  ;;  %416 = vmatpush.bf16.msra.mxu0 %v1170_v21  ;;  %v1235_v47 = vld [vmem:[%s1693_s2] ss:$0 sm:$0xff]  ;;  %vm463_vm10 = vcmask 130048   ;;  %vm596_vm12 = vcmask 1043456  }
  0x15   : > { %s1168_s22 = sshll.u32 %s327_s21, 4  ;;  %s1347_s21 = smov 96   ;;  %v1500_v60 = vshrl.u32 %v426_v59, 7  ;;  %v1502_v61 = vand.u32 127, %v426_v59 }
  0x16   : > { %s330_s25 = scalar_lea.vmem %s1691_s0, %s1168_s22  ;;  %s1348_s22 = smov 120  }
  0x17   : > { %v1462_v0 = vld [vmem:[%s330_s25] sm:$0xff]  ;;  %v1466_v2 = vld [vmem:[%s330_s25 + $0x8] sm:$0xff]  ;;  %vm431_vm9 = vcmp.ge.s32.totalorder %v1500_v60, %v1502_v61  ;;  %s1351_s25 = smov 72  }
  0x18   : > { %v335_v1 = vsel %vm334_vm0, %v1462_v0, 0.0  ;;  %v338_v3 = vsel %vm334_vm0, %v1466_v2, 0.0  ;;  %417 = vmatpush.bf16.msra.mxu0 %v1169_v22 }
  0x19   : > { %336 = vadd.xlane.f32.xlu0 %v335_v1 }
  0x1a   : > { %v1240_v5 = vpop.eup %1239 }
  0x1b   : > { %v342_v6 = vmul.f32 32.0, %v1240_v5  ;;  %vm346_vm1 = vweird.f32 %v1240_v5 }
  0x1d   : > { %v343_v7 = vsub.f32 1.0, %v342_v6 }
  0x1f   : > { %v344_v8 = vmul.f32 %v1240_v5, %v343_v7  ;;  %v514_v7 = vld [vmem:[%s1694_s3] sm:$0xf] }
  0x21   : > { %339 = vadd.xlane.f32.xlu0 %v338_v3  ;;  %v345_v9 = vadd.f32 %v1240_v5, %v344_v8  ;;  %v1511_v3 = vadd.s32 8, %v1500_v60  ;;  %v618_v8 = vsel %vm596_vm12, %v514_v7, 0 }
  0x22   : > { %627 = vmatpush.bf16.msra.mxu1 %v618_v8 }
  0x23   : > { %v1470_v10 = vsel %vm346_vm1, %v1240_v5, %v345_v9  ;;  %vm432_vm11 = vcmp.ge.s32.totalorder %v1511_v3, %v1502_v61 }
  0x8c   : > { %v337_v11 = vpop.xlane.xlu0 %336 }
  0x8d   : > { %v348_v12 = vmul.f32 %v1470_v10, %v337_v11 }
  0x8f   : > { %v350_v13 = vsub.f32 %v1462_v0, %v348_v12 }
  0x91   : > { %v352_v14 = vmul.f32 %v350_v13, %v350_v13 }
  0x93   : > { %v354_v15 = vsel %vm334_vm0, %v352_v14, 0.0 }
  0x94   : > { %355 = vadd.xlane.f32.xlu1 %v354_v15  ;;  %v340_v16 = vpop.xlane.xlu0 %339 }
  0x95   : > { %v349_v17 = vmul.f32 %v1470_v10, %v340_v16 }
  0x97   : > { %v351_v18 = vsub.f32 %v1466_v2, %v349_v17 }
  0x99   : > { %v353_v19 = vmul.f32 %v351_v18, %v351_v18 }
  0x9b   : > { %v357_v20 = vsel %vm334_vm0, %v353_v19, 0.0 }
  0x9c   : > { %358 = vadd.xlane.f32.xlu1 %v357_v20 }
 0x107   : > { %v356_v23 = vpop.xlane.xlu1 %355 }
 0x108   : > { %v360_v24 = vmul.f32 %v356_v23, %v1470_v10 }
 0x10a   : > { %v362_v25 = vadd.f32 1e-05, %v360_v24 }
 0x10c   : > { %1241 = vrsqrt.f32 %v362_v25  ;;  %vm370_vm3 = vweird.f32 %v362_v25 }
 0x10f   : > { %v359_v26 = vpop.xlane.xlu1 %358 }
 0x110   : > { %v361_v27 = vmul.f32 %v359_v26, %v1470_v10 }
 0x112   : > { %v1242_v28 = vpop.eup %1241  ;;  %v363_v29 = vadd.f32 1e-05, %v361_v27 }
 0x113   : > { %v365_v30 = vmul.f32 %v1242_v28, %v362_v25  ;;  %vm371_vm2 = vweird.f32 %v1242_v28 }
 0x114   : > { %1243 = vrsqrt.f32 %v363_v29  ;;  %vm372_vm5 = vmor %vm370_vm3, %vm371_vm2  ;;  %vm380_vm6 = vweird.f32 %v363_v29 }
 0x115   : > { %v366_v31 = vmul.f32 %v1242_v28, %v365_v30 }
 0x117   : > { %v367_v32 = vmul.f32 0.5, %v366_v31 }
 0x119   : > { %v368_v34 = vsub.f32 1.5, %v367_v32 }
 0x11a   : > { %v1244_v33 = vpop.eup %1243 }
 0x11b   : > { %v375_v35 = vmul.f32 %v1244_v33, %v363_v29  ;;  %v369_v37 = vmul.f32 %v1242_v28, %v368_v34  ;;  %vm381_vm4 = vweird.f32 %v1244_v33 }
 0x11c   : > { %vm382_vm7 = vmor %vm380_vm6, %vm381_vm4 }
 0x11d   : > { %v376_v36 = vmul.f32 %v1244_v33, %v375_v35  ;;  %v373_v41 = vsel %vm372_vm5, %v1242_v28, %v369_v37 }
 0x11e   : > { %v384_v43 = vmul.f32 %v373_v41, %v350_v13 }
 0x11f   : > { %v377_v38 = vmul.f32 0.5, %v376_v36 }
 0x121   : > { %v378_v39 = vsub.f32 1.5, %v377_v38 }
 0x123   : > { %v379_v40 = vmul.f32 %v1244_v33, %v378_v39 }
 0x125   : > { %v383_v42 = vsel %vm382_vm7, %v1244_v33, %v379_v40 }
 0x126   : > { %v385_v44 = vmul.f32 %v383_v42, %v351_v18 }
 0x128   : > { %v386_v45 = vpack.c.bf16 %v385_v44, %v384_v43 }
 0x12a   : > { %1106 = vmatmul.msk.bf16.vlgmr.msra.gmra.mxu0 %vm334_vm0, %v386_v45 }
 0x1a7   : > { %v419_v46 = vpop.f32.mrf.mxu0 }
 0x1a8   : > { %v420_v48 = vadd.f32 %v1235_v47, %v419_v46 }
 0x1aa   : > { %v424_v50 = vpack.c.bf16 %v420_v48, %v420_v48 }
 0x1ac   : > { %v435_v53 = vunpack.c.l.b16 %v424_v50 }
 0x1af   : > { %v421_v49 = vpop.f32.mrf.mxu0 }
 0x1b0   : > { %v422_v51 = vadd.f32 %v1235_v47, %v421_v49 }
 0x1b2   : > { %v425_v52 = vpack.c.bf16 %v422_v51, %v422_v51 }
 0x1b4   : > { %v436_v54 = vunpack.c.l.b16 %v425_v52 }
 0x1b6   : > { %v1490_v55 = vpack.c.b16 %v436_v54, %v435_v53 }
 0x1b8   : > { %489 = vrot.lane.b32.xlu1 %v1490_v55, %s1346_s17  ;;  %438 = vrot.lane.b32.xlu2 %v1490_v55, %s1347_s21  ;;  %s1356_s17 = smov 48  }
 0x1c0   : > { %515 = vrot.lane.b32.xlu1 %v1490_v55, %s1348_s22 }
 0x1c8   : > { %636 = vrot.lane.b32.xlu1 %v1490_v55, %s1349_s23 }
 0x1d0   : > { %634 = vrot.lane.b32.xlu1 %v1490_v55, %s1350_s24 }
 0x212   : > { %v439_v56 = vpop.permute.xlu2 %438 }
 0x213   : > { %v445_v57 = vsel %vm440_vm8, %v439_v56, 0 }
 0x214   : > { %454 = vmatpush.bf16.xpose.msra.mxu3 %v445_v57 }
 0x21b   : > { %1107 = vmatmul.msk.bf16.vlgmr.msra.gmra.mxu3 %vm440_vm8, %v1490_v55 }
 0x22a   : > { %v490_v58 = vpop.permute.xlu1 %489 }
 0x22b   : > { %502 = vmatpush.bf16.msra.mxu2 %v490_v58 }
 0x232   : > { %v516_v20 = vpop.permute.xlu1 %515 }
 0x23a   : > { %v637_v28 = vpop.permute.xlu1 %636 }
 0x23b   : > { %v642_v31 = vsel %vm440_vm8, %v637_v28, 0 }
 0x242   : > { %v635_v32 = vpop.permute.xlu1 %634 }
 0x29e   : > { %v456_v62 = vpop.f32.mrf.mxu3 }
 0x29f   : > { %v461_v63 = vsel %vm431_vm9, %v456_v62, -1e+30 }
 0x2a0   : > { %v464_v1 = vsel %vm463_vm10, %v461_v63, -inf }
 0x2a1   : > { %465 = vmax.xlane.f32.xlu2 %v464_v1 }
 0x2a6   : > { %v458_v4 = vpop.f32.mrf.mxu3 }
 0x2a7   : > { %v462_v5 = vsel %vm432_vm11, %v458_v4, -1e+30 }
 0x2a8   : > { %v467_v6 = vsel %vm463_vm10, %v462_v5, -inf }
 0x2a9   : > { %468 = vmax.xlane.f32.xlu0 %v467_v6 }
 0x2b9   : > { %736 = vrot.lane.b32.xlu2 %v1490_v55, %s1351_s25 }
 0x2bd   : > { %517 = vrot.lane.b32.xlu0 %v1490_v55, %s1352_s26 }
 0x314   : > { %v466_v9 = vpop.xlane.xlu2 %465 }
 0x315   : > { %v470_v11 = vsub.f32 %v461_v63, %v466_v9 }
 0x317   : > { %v472_v12 = vmul.f32 1.442695, %v470_v11 }
 0x319   : > { %1245 = vpow2.f32 %v472_v12 }
 0x31c   : > { %v737_v13 = vpop.permute.xlu2 %736  ;;  %v469_v14 = vpop.xlane.xlu0 %468 }
 0x31d   : > { %v471_v15 = vsub.f32 %v462_v5, %v469_v14  ;;  %v742_v16 = vsel %vm440_vm8, %v737_v13, 0 }
 0x31e   : > { %751 = vmatpush.bf16.xpose.msrb.mxu1 %v742_v16 }
 0x31f   : > { %v1246_v17 = vpop.eup %1245  ;;  %v474_v18 = vmul.f32 1.442695, %v471_v15 }
 0x320   : > { %v476_v19 = vsel %vm463_vm10, %v1246_v17, 0.0  ;;  %v482_v21 = vpack.c.bf16 %v1246_v17, %v1246_v17 }
 0x321   : > { %1247 = vpow2.f32 %v474_v18  ;;  %477 = vadd.xlane.f32.xlu0 %v476_v19 }
 0x322   : > { %v486_v25 = vunpack.c.l.b16 %v482_v21 }
 0x327   : > { %v1248_v22 = vpop.eup %1247 }
 0x328   : > { %v479_v23 = vsel %vm463_vm10, %v1248_v22, 0.0  ;;  %v483_v24 = vpack.c.bf16 %v1248_v22, %v1248_v22 }
 0x329   : > { %480 = vadd.xlane.f32.xlu0 %v479_v23 }
 0x32a   : > { %v487_v26 = vunpack.c.l.b16 %v483_v24 }
 0x32c   : > { %v488_v27 = vpack.c.b16 %v487_v26, %v486_v25 }
 0x32e   : > { %1108 = vmatmul.msk.bf16.vlgmr.msra.gmra.mxu2 %vm463_vm10, %v488_v27 }
 0x32f   : > { %v518_v29 = vpop.permute.xlu0 %517 }
 0x330   : > { %v523_v30 = vsel %vm440_vm8, %v518_v29, 0 }
 0x331   : > { %532 = vmatpush.bf16.xpose.msrb.mxu3 %v523_v30 }
 0x338   : > { %1109 = vmatmul.msk.bf16.vlgmr.msrb.gmra.mxu3 %vm440_vm8, %v516_v20 }
 0x339   : > { %651 = vmatpush.bf16.xpose.msra.mxu3 %v642_v31 }
 0x33d   : > { %734 = vrot.lane.b32.xlu0 %v1490_v55, %s1353_s29 }
 0x348   : > { %1114 = vmatmul.msk.bf16.vlgmr.msra.gmra.mxu3 %vm440_vm8, %v635_v32 }
 0x394   : > { %v478_v33 = vpop.xlane.xlu0 %477 }
 0x395   : > { %1249 = vrcp.f32 %v478_v33 }
 0x39b   : > { %v1250_v36 = vpop.eup %1249 }
 0x39c   : > { %v481_v34 = vpop.xlane.xlu0 %480 }
 0x39d   : > { %1251 = vrcp.f32 %v481_v34 }
 0x3a3   : > { %v1252_v37 = vpop.eup %1251 }
 0x3af   : > { %v735_v50 = vpop.permute.xlu0 %734 }
 0x3b1   : > { %v504_v35 = vpop.f32.mrf.mxu2 }
 0x3b2   : > { %v511_v39 = vmul.f32 %v1250_v36, %v504_v35 }
 0x3b9   : > { %v506_v38 = vpop.f32.mrf.mxu2 }
 0x3ba   : > { %v512_v40 = vmul.f32 %v1252_v37, %v506_v38 }
 0x3bb   : > { %v534_v41 = vpop.f32.mrf.mxu3 }
 0x3bc   : > { %v513_v42 = vpack.c.bf16 %v512_v40, %v511_v39  ;;  %v539_v43 = vsel %vm431_vm9, %v534_v41, -1e+30 }
 0x3bd   : > { %v541_v44 = vsel %vm463_vm10, %v539_v43, -inf }
 0x3be   : > { %542 = vmax.xlane.f32.xlu1 %v541_v44  ;;  %1113 = vmatmul.msk.bf16.vlgmr.msra.gmra.mxu1 %vm440_vm8, %v513_v42 }
 0x3c3   : > { %v536_v45 = vpop.f32.mrf.mxu3 }
 0x3c4   : > { %v540_v46 = vsel %vm432_vm11, %v536_v45, -1e+30 }
 0x3c5   : > { %v544_v47 = vsel %vm463_vm10, %v540_v46, -inf }
 0x3c6   : > { %545 = vmax.xlane.f32.xlu0 %v544_v47 }
 0x3cb   : > { %v653_v48 = vpop.f32.mrf.mxu3 }
 0x3cc   : > { %v1546_v49 = vsel %vm431_vm9, %v653_v48, -1e+30 }
 0x3cd   : > { %v660_v51 = vsel %vm463_vm10, %v1546_v49, -inf }
 0x3ce   : > { %661 = vmax.xlane.f32.xlu2 %v660_v51  ;;  %1118 = vmatmul.msk.bf16.vlgmr.msrb.gmra.mxu1 %vm440_vm8, %v735_v50  ;;  %v1111_v50 = vld [vmem:[%s1694_s3 + $0x4] sm:$0xf] }
 0x3cf   : > { %v598_v51 = vsel %vm596_vm12, %v1111_v50, 0  ;;  %v1171_v50 = vld [vmem:[%s1696_s5] sm:$0xff] }
 0x3d0   : > { %607 = vmatpush.bf16.msrb.mxu0 %v598_v51 }
 0x3d3   : > { %v655_v52 = vpop.f32.mrf.mxu3 }
 0x3d4   : > { %v659_v53 = vsel %vm432_vm11, %v655_v52, -1e+30 }
 0x3d5   : > { %v663_v54 = vsel %vm463_vm10, %v659_v53, -inf }
 0x3d6   : > { %664 = vmax.xlane.f32.xlu1 %v663_v54 }
 0x3da   : > { %566 = vrot.lane.b32.xlu0 %v1490_v55, %s1354_s14  ;;  %s1095_s14 = sshll.u32 %s323_s27, 4 }
 0x3db   : > { %s325_s23 = scalar_lea.vmem [#allocation2], %s1095_s14 }
 0x3dc   : > { %s1026_s24 = sshll.u32 %s325_s23, 4  ;;  %s1027_s24 = int_to_ptr.vmem [resolvable:$true] %s1026_s24 }
 0x431   : > { %v543_v56 = vpop.xlane.xlu1 %542 }
 0x432   : > { %v547_v57 = vsub.f32 %v539_v43, %v543_v56 }
 0x434   : > { %v549_v58 = vmul.f32 1.442695, %v547_v57 }
 0x436   : > { %1253 = vpow2.f32 %v549_v58 }
 0x439   : > { %v546_v59 = vpop.xlane.xlu0 %545 }
 0x43a   : > { %v548_v62 = vsub.f32 %v540_v46, %v546_v59 }
 0x43b   : > { %v1556_v63 = vpop.f32.mrf.mxu1 }
 0x43c   : > { %v1254_v1 = vpop.eup %1253  ;;  %v551_v4 = vmul.f32 1.442695, %v548_v62 }
 0x43d   : > { %v553_v5 = vsel %vm463_vm10, %v1254_v1, 0.0  ;;  %v559_v9 = vpack.c.bf16 %v1254_v1, %v1254_v1 }
 0x43e   : > { %1255 = vpow2.f32 %v551_v4  ;;  %554 = vadd.xlane.f32.xlu0 %v553_v5  ;;  %v1120_v4 = vld [vmem:[%s1694_s3 + $0xc] sm:$0xf] }
 0x43f   : > { %v563_v13 = vunpack.c.l.b16 %v559_v9  ;;  %v816_v5 = vsel %vm596_vm12, %v1120_v4, 0 }
 0x441   : > { %v662_v3 = vpop.xlane.xlu2 %661 }
 0x442   : > { %v666_v31 = vsub.f32 %v1546_v49, %v662_v3 }
 0x443   : > { %v1559_v6 = vpop.f32.mrf.mxu1 }
 0x444   : > { %v1256_v7 = vpop.eup %1255  ;;  %v668_v34 = vmul.f32 1.442695, %v666_v31  ;;  %v1236_v31 = vld [vmem:[%s1695_s4] ss:$0 sm:$0xff] }
 0x445   : > { %v560_v8 = vpack.c.bf16 %v1256_v7, %v1256_v7  ;;  %v556_v23 = vsel %vm463_vm10, %v1256_v7, 0.0  ;;  %v1116_v7 = vld [vmem:[%s1694_s3 + $0x8] sm:$0xf] }
 0x447   : > { %v564_v11 = vunpack.c.l.b16 %v560_v8  ;;  %v716_v8 = vsel %vm596_vm12, %v1116_v7, 0 }
 0x448   : > { %725 = vmatpush.bf16.msra.mxu0 %v716_v8 }
 0x449   : > { %v565_v17 = vpack.c.b16 %v564_v11, %v563_v13  ;;  %v665_v60 = vpop.xlane.xlu1 %664 }
 0x44a   : > { %v667_v21 = vsub.f32 %v659_v53, %v665_v60 }
 0x44b   : > { %v753_v12 = vpop.f32.mrf.mxu1 }
 0x44c   : > { %v758_v14 = vsel %vm431_vm9, %v753_v12, -1e+30  ;;  %v567_v15 = vpop.permute.xlu0 %566  ;;  %v670_v22 = vmul.f32 1.442695, %v667_v21 }
 0x44d   : > { %579 = vmatpush.bf16.msrb.mxu2 %v567_v15  ;;  %v760_v16 = vsel %vm463_vm10, %v758_v14, -inf }
 0x44e   : > { %761 = vmax.xlane.f32.xlu2 %v760_v16  ;;  %1257 = vpow2.f32 %v670_v22 }
 0x450   : > { %1110 = vmatmul.msk.bf16.vlgmr.msrb.gmra.mxu2 %vm463_vm10, %v565_v17 }
 0x453   : > { %v755_v18 = vpop.f32.mrf.mxu1 }
 0x454   : > { %v759_v19 = vsel %vm432_vm11, %v755_v18, -1e+30  ;;  %v1258_v24 = vpop.eup %1257 }
 0x455   : > { %v763_v20 = vsel %vm463_vm10, %v759_v19, -inf  ;;  %v675_v61 = vsel %vm463_vm10, %v1258_v24, 0.0  ;;  %v679_v43 = vpack.c.bf16 %v1258_v24, %v1258_v24 }
 0x456   : > { %764 = vmax.xlane.f32.xlu1 %v763_v20 }
 0x457   : > { %v683_v46 = vunpack.c.l.b16 %v679_v43 }
 0x466   : > { %785 = vrot.lane.b32.xlu2 %v1490_v55, %s1355_s16  ;;  %s1181_s16 = sshll.u32 %s1430_s13, 4  ;;  %s1014_s13 = scalar_lea.sflag [#allocation3], %s323_s27 }
 0x467   : > { %s1025_s22 = scalar_lea.hbm %s1700_s9, %s1181_s16  ;;  %s1301_s16 = scalar_lea.hbm %s1700_s9, 32 }
 0x468   : > { %s1028_s25 = sshll.u32 %s1025_s22, 4  ;;  %s1029_s25 = int_to_ptr.hbm [resolvable:$true] %s1028_s25 }
 0x469   : > { %s1295_s26 = sshra.s32 %s1029_s25, 4  ;;  %s1296_s26 = int_to_ptr.hbm [resolvable:$true] %s1295_s26 }
 0x46a   : > { %s1297_s28 = scalar_lea.hbm %s1296_s26, 16  ;;  %p1302_p0 = scmp.lt.s32.totalorder %s1296_s26, %s1700_s9 }
 0x46b   : > { %p1298_p11 = scmp.ne.s32.totalorder %s1296_s26, %s1297_s28  ;;  %p1303_p1 = scmp.lt.s32.totalorder %s1301_s16, %s1297_s28 }
 0x46d   : > { %p1299_p12 = pnand %p1298_p11, %p1447_p5  ;;  %p1304_p2 = por %p1303_p1, %p1302_p0 }
 0x46f   : > { %685 = vrot.lane.b32.xlu1 %v1490_v55, %s1356_s17  ;;  %p1300_p13 = pneg %p1299_p12 }
 0x471   : > { %p1305_p3 = pnand %p1304_p2, %p1300_p13 }
 0x48f   : > { %557 = vadd.xlane.f32.xlu2 %v556_v23 }
 0x497   : > { %676 = vadd.xlane.f32.xlu2 %v675_v61 }
 0x4b1   : > { %v555_v52 = vpop.xlane.xlu0 %554 }
 0x4c1   : > { %v762_v25 = vpop.xlane.xlu2 %761 }
 0x4c2   : > { %v766_v26 = vsub.f32 %v758_v14, %v762_v25 }
 0x4c4   : > { %v768_v27 = vmul.f32 1.442695, %v766_v26 }
 0x4c6   : > { %1259 = vpow2.f32 %v768_v27 }
 0x4c9   : > { %v786_v28 = vpop.permute.xlu2 %785  ;;  %v765_v29 = vpop.xlane.xlu1 %764 }
 0x4ca   : > { %v767_v30 = vsub.f32 %v759_v19, %v765_v29  ;;  %798 = vmatpush.bf16.msrb.mxu3 %v786_v28 }
 0x4cc   : > { %v1260_v55 = vpop.eup %1259  ;;  %v770_v32 = vmul.f32 1.442695, %v767_v30 }
 0x4cd   : > { %v772_v33 = vsel %vm463_vm10, %v1260_v55, 0.0  ;;  %v778_v35 = vpack.c.bf16 %v1260_v55, %v1260_v55 }
 0x4ce   : > { %1261 = vpow2.f32 %v770_v32  ;;  %773 = vadd.xlane.f32.xlu1 %v772_v33 }
 0x4cf   : > { %1263 = vpow2.f32 %v668_v34  ;;  %v782_v39 = vunpack.c.l.b16 %v778_v35 }
 0x4d0   : > { %1265 = vrcp.f32 %v555_v52 }
 0x4d3   : > { %v581_v53 = vpop.f32.mrf.mxu2 }
 0x4d4   : > { %v1262_v36 = vpop.eup %1261 }
 0x4d5   : > { %v779_v37 = vpack.c.bf16 %v1262_v36, %v1262_v36  ;;  %v775_v38 = vsel %vm463_vm10, %v1262_v36, 0.0  ;;  %v1264_v42 = vpop.eup %1263 }
 0x4d6   : > { %776 = vadd.xlane.f32.xlu0 %v775_v38  ;;  %v678_v44 = vpack.c.bf16 %v1264_v42, %v1264_v42  ;;  %v672_v45 = vsel %vm463_vm10, %v1264_v42, 0.0  ;;  %v1266_v56 = vpop.eup %1265 }
 0x4d7   : > { %v783_v40 = vunpack.c.l.b16 %v779_v37  ;;  %v588_v59 = vmul.f32 %v1266_v56, %v581_v53  ;;  %v1179_v56 = vld [vmem:[%s1698_s7 + $0x30] sm:$0xff] }
 0x4d8   : > { %v682_v47 = vunpack.c.l.b16 %v678_v44 }
 0x4d9   : > { %v784_v41 = vpack.c.b16 %v783_v40, %v782_v39 }
 0x4da   : > { %v684_v49 = vpack.c.b16 %v683_v46, %v682_v47 }
 0x4db   : > { %1119 = vmatmul.msk.bf16.vlgmr.msrb.gmra.mxu3 %vm463_vm10, %v784_v41  ;;  %v583_v58 = vpop.f32.mrf.mxu2 }
 0x4de   : > { %673 = vadd.xlane.f32.xlu0 %v672_v45 }
 0x4e1   : > { %v686_v48 = vpop.permute.xlu1 %685 }
 0x4e2   : > { %698 = vmatpush.bf16.msra.mxu2 %v686_v48 }
 0x4e5   : > { %1115 = vmatmul.msk.bf16.vlgmr.msra.gmra.mxu2 %vm463_vm10, %v684_v49  ;;  %v1172_v49 = vld [vmem:[%s1696_s5 + $0x8] sm:$0xff] }
 0x4e6   : > { %825 = vmatpush.bf16.msrb.mxu2 %v816_v5  ;;  %v1177_v5 = vld [vmem:[%s1698_s7 + $0x20] sm:$0xff] }
 0x502   : > { %v558_v54 = vpop.xlane.xlu2 %557 }
 0x503   : > { %1267 = vrcp.f32 %v558_v54  ;;  %v1180_v54 = vld [vmem:[%s1698_s7 + $0x38] sm:$0xff] }
 0x504   : > { %995 = vmatpush.bf16.msra.mxu1 %v1180_v54 }
 0x508   : > { %996 = vmatpush.bf16.msra.mxu1 %v1179_v56 }
 0x509   : > { %v1268_v57 = vpop.eup %1267 }
 0x50a   : > { %v589_v62 = vmul.f32 %v1268_v57, %v583_v58  ;;  %v677_v15 = vpop.xlane.xlu2 %676 }
 0x50c   : > { %v590_v1 = vpack.c.bf16 %v589_v62, %v588_v59  ;;  %v1178_v59 = vld [vmem:[%s1698_s7 + $0x28] sm:$0xff] }
 0x50d   : > { %997 = vmatpush.bf16.msra.mxu1 %v1178_v59 }
 0x50e   : > { %1112 = vmatmul.msk.bf16.vlgmr.msrb.gmra.mxu0 %vm440_vm8, %v590_v1 }
 0x50f   : > { %916 = vmatpush.bf16.msrb.mxu0 %v1172_v49 }
 0x511   : > { %998 = vmatpush.bf16.msra.mxu1 %v1177_v5 }
 0x513   : > { %917 = vmatpush.bf16.msrb.mxu0 %v1171_v50 }
 0x541   : > { %v774_v9 = vpop.xlane.xlu1 %773 }
 0x542   : > { %1269 = vrcp.f32 %v774_v9 }
 0x548   : > { %v1270_v13 = vpop.eup %1269 }
 0x549   : > { %v777_v11 = vpop.xlane.xlu0 %776 }
 0x54a   : > { %1271 = vrcp.f32 %v777_v11 }
 0x54b   : > { %1273 = vrcp.f32 %v677_v15 }
 0x550   : > { %v1272_v14 = vpop.eup %1271 }
 0x551   : > { %v674_v17 = vpop.xlane.xlu0 %673  ;;  %v1274_v21 = vpop.eup %1273 }
 0x552   : > { %1275 = vrcp.f32 %v674_v17 }
 0x558   : > { %v1276_v22 = vpop.eup %1275 }
 0x55e   : > { %v800_v12 = vpop.f32.mrf.mxu3 }
 0x55f   : > { %v807_v18 = vmul.f32 %v1270_v13, %v800_v12 }
 0x566   : > { %v802_v16 = vpop.f32.mrf.mxu3 }
 0x567   : > { %v808_v19 = vmul.f32 %v1272_v14, %v802_v16 }
 0x568   : > { %v700_v20 = vpop.f32.mrf.mxu2 }
 0x569   : > { %v809_v60 = vpack.c.bf16 %v808_v19, %v807_v18  ;;  %v707_v24 = vmul.f32 %v1276_v22, %v700_v20  ;;  %v1175_v22 = vld [vmem:[%s1698_s7 + $0x10] sm:$0xff] }
 0x56b   : > { %1121 = vmatmul.msk.bf16.vlgmr.msrb.gmra.mxu2 %vm440_vm8, %v809_v60 }
 0x570   : > { %v702_v23 = vpop.f32.mrf.mxu2 }
 0x571   : > { %v708_v61 = vmul.f32 %v1274_v21, %v702_v23  ;;  %v1176_v21 = vld [vmem:[%s1698_s7 + $0x18] sm:$0xff]  ;;  %v1174_v23 = vld [vmem:[%s1698_s7 + $0x8] sm:$0xff] }
 0x572   : > { %999 = vmatpush.bf16.msra.mxu1 %v1176_v21 }
 0x573   : > { %v709_v3 = vpack.c.bf16 %v708_v61, %v707_v24  ;;  %v1173_v24 = vld [vmem:[%s1698_s7] sm:$0xff] }
 0x575   : > { %1117 = vmatmul.msk.bf16.vlgmr.msra.gmra.mxu0 %vm440_vm8, %v709_v3  ;;  %v1237_v3 = vld [vmem:[%s1697_s6] ss:$0 sm:$0xff] }
 0x576   : > { %1000 = vmatpush.bf16.msra.mxu1 %v1175_v22 }
 0x57a   : > { %1001 = vmatpush.bf16.msra.mxu1 %v1174_v23 }
 0x57e   : > { %1002 = vmatpush.bf16.msra.mxu1 %v1173_v24 }
 0x58b   : > { %v609_v25 = vpop.f32.mrf.mxu0 }
 0x58c   : > { %v630_v27 = vadd.f32 %v1556_v63, %v609_v25 }
 0x593   : > { %v611_v26 = vpop.f32.mrf.mxu0 }
 0x594   : > { %v632_v33 = vadd.f32 %v1559_v6, %v611_v26 }
 0x5ee   : > { %v827_v28 = vpop.f32.mrf.mxu2 }
 0x5f2   : > { %v727_v29 = vpop.f32.mrf.mxu0 }
 0x5f3   : > { %v732_v30 = vadd.f32 %v727_v29, %v630_v27 }
 0x5f5   : > { %v832_v55 = vadd.f32 %v827_v28, %v732_v30 }
 0x5f6   : > { %v829_v63 = vpop.f32.mrf.mxu2 }
 0x5f7   : > { %v834_v32 = vadd.f32 %v832_v55, %v1462_v0  ;;  %v1238_v55 = vld [vmem:[%s1699_s8] ss:$0 sm:$0xff] }
 0x5f9   : > { %v1601_v34 = vadd.f32 %v1236_v31, %v834_v32 }
 0x5fa   : > { %v729_v35 = vpop.f32.mrf.mxu0 }
 0x5fb   : > { %v733_v36 = vadd.f32 %v729_v35, %v632_v33  ;;  %v842_v37 = vsel %vm334_vm0, %v1601_v34, 0.0 }
 0x5fc   : > { %843 = vadd.xlane.f32.xlu0 %v842_v37 }
 0x5fd   : > { %v833_v38 = vadd.f32 %v829_v63, %v733_v36 }
 0x5ff   : > { %v835_v39 = vadd.f32 %v833_v38, %v1466_v2 }
 0x601   : > { %v1606_v40 = vadd.f32 %v1236_v31, %v835_v39 }
 0x603   : > { %v845_v41 = vsel %vm334_vm0, %v1606_v40, 0.0 }
 0x604   : > { %846 = vadd.xlane.f32.xlu1 %v845_v41 }
 0x66f   : > { %v844_v0 = vpop.xlane.xlu0 %843 }
 0x670   : > { %v848_v6 = vmul.f32 %v844_v0, %v1470_v10 }
 0x672   : > { %v850_v42 = vsub.f32 %v1601_v34, %v848_v6 }
 0x674   : > { %v852_v43 = vmul.f32 %v850_v42, %v850_v42 }
 0x676   : > { %v854_v44 = vsel %vm334_vm0, %v852_v43, 0.0 }
 0x677   : > { %855 = vadd.xlane.f32.xlu2 %v854_v44  ;;  %v847_v45 = vpop.xlane.xlu1 %846 }
 0x678   : > { %v849_v46 = vmul.f32 %v847_v45, %v1470_v10 }
 0x67a   : > { %v851_v2 = vsub.f32 %v1606_v40, %v849_v46 }
 0x67c   : > { %v853_v47 = vmul.f32 %v851_v2, %v851_v2 }
 0x67e   : > { %v857_v48 = vsel %vm334_vm0, %v853_v47, 0.0 }
 0x67f   : > { %858 = vadd.xlane.f32.xlu0 %v857_v48 }
 0x6ea   : > { %v856_v51 = vpop.xlane.xlu2 %855 }
 0x6eb   : > { %v860_v52 = vmul.f32 %v856_v51, %v1470_v10 }
 0x6ed   : > { %v862_v53 = vadd.f32 1e-05, %v860_v52 }
 0x6ef   : > { %1277 = vrsqrt.f32 %v862_v53  ;;  %vm870_vm14 = vweird.f32 %v862_v53 }
 0x6f2   : > { %v859_v57 = vpop.xlane.xlu0 %858 }
 0x6f3   : > { %v861_v58 = vmul.f32 %v859_v57, %v1470_v10 }
 0x6f5   : > { %v1278_v62 = vpop.eup %1277  ;;  %v863_v1 = vadd.f32 1e-05, %v861_v58 }
 0x6f6   : > { %v865_v4 = vmul.f32 %v1278_v62, %v862_v53  ;;  %vm871_vm13 = vweird.f32 %v1278_v62 }
 0x6f7   : > { %1279 = vrsqrt.f32 %v863_v1  ;;  %vm872_vm1 = vmor %vm870_vm14, %vm871_vm13  ;;  %vm880_vm2 = vweird.f32 %v863_v1 }
 0x6f8   : > { %v866_v7 = vmul.f32 %v1278_v62, %v865_v4 }
 0x6fa   : > { %v867_v8 = vmul.f32 0.5, %v866_v7 }
 0x6fc   : > { %v868_v11 = vsub.f32 1.5, %v867_v8 }
 0x6fd   : > { %v1280_v9 = vpop.eup %1279 }
 0x6fe   : > { %v875_v10 = vmul.f32 %v1280_v9, %v863_v1  ;;  %v869_v13 = vmul.f32 %v1278_v62, %v868_v11  ;;  %vm881_vm15 = vweird.f32 %v1280_v9 }
 0x6ff   : > { %vm882_vm3 = vmor %vm880_vm2, %vm881_vm15 }
 0x700   : > { %v876_v12 = vmul.f32 %v1280_v9, %v875_v10  ;;  %v873_v16 = vsel %vm872_vm1, %v1278_v62, %v869_v13 }
 0x701   : > { %v884_v19 = vmul.f32 %v873_v16, %v850_v42 }
 0x702   : > { %v877_v14 = vmul.f32 0.5, %v876_v12 }
 0x704   : > { %v878_v15 = vsub.f32 1.5, %v877_v14 }
 0x706   : > { %v879_v17 = vmul.f32 %v1280_v9, %v878_v15 }
 0x708   : > { %v883_v18 = vsel %vm882_vm3, %v1280_v9, %v879_v17 }
 0x709   : > { %v885_v20 = vmul.f32 %v883_v18, %v851_v2 }
 0x70b   : > { %v886_v60 = vpack.c.bf16 %v885_v20, %v884_v19 }
 0x70d   : > { %1130 = vmatmul.msk.bf16.vlgmr.msrb.gmra.mxu0 %vm334_vm0, %v886_v60 }
 0x78a   : > { %v919_v61 = vpop.f32.mrf.mxu0 }
 0x78b   : > { %v920_v25 = vadd.f32 %v1237_v3, %v919_v61 }
 0x78d   : > { %v924_v28 = vmax.f32 %v920_v25, 0.0 }
 0x792   : > { %v921_v26 = vpop.f32.mrf.mxu0 }
 0x793   : > { %v922_v27 = vadd.f32 %v1237_v3, %v921_v26 }
 0x795   : > { %v925_v29 = vmax.f32 %v922_v27, 0.0 }
 0x797   : > { %v926_v30 = vpack.c.bf16 %v925_v29, %v924_v28 }
 0x799   : > { %1003 = vmatmul.bf16.vlgmr.msra.gmra.mxu1 %v926_v30 }
 0x816   : > { %v1004_v31 = vpop.f32.mrf.mxu1 }
 0x817   : > { %v1005_v32 = vadd.f32 %v1238_v55, %v1004_v31 }
 0x819   : > { %v1009_v33 = vadd.f32 %v1005_v32, %v1601_v34 }
 0x81b   : > { %1011 = vst.msk [vmem:[%s325_s23] sm:$0xff] %vm334_vm0, %v1009_v33 }
 0x81e   : > { %v1006_v35 = vpop.f32.mrf.mxu1 }
 0x81f   : > { %v1007_v36 = vadd.f32 %v1238_v55, %v1006_v35 }
 0x821   : > { %v1010_v37 = vadd.f32 %v1007_v36, %v1606_v40 }
 0x823   : > { %1012 = vst.msk [vmem:[%s325_s23 + $0x8] sm:$0xff] %vm334_vm0, %v1010_v37 }
 0x824   : > { %1308 = shalt.err (!%p1305_p3)
}
 0x825   : > { %s1357_s27 = smov 128   ;;  %s1358_s22 = smov 8  }
 0x826   : > { %1182 = dma.vmem_to_hbm [thread:$0]  (%p1447_p5), %s1027_s24, 256, %s1029_s25, %s1014_s13, %s1357_s27, %s1357_s27, %s1358_s22  }
 0x827 PF: > { %p1188_p4 = scmp.ge.s32.totalorder %s1343_s12, 2  ;;  %s1043_s23 = sand.u32 1, %s1331_s30  }
 0x828   : > { %s1044_s29 = scalar_lea.sflag [#allocation3], %s1043_s23 }
 0x829   : > { %p1185_p7 = pnand %p1188_p4, %p1451_p6 }
 0x82b   : > { %p1186_p8 = pneg %p1185_p7 }
 0x82d   : > { %1326 = dma.done.wait (%p1186_p8), %s1044_s29, 256  }
 0x82e   : > { %1328 = vsyncadd (%p1186_p8), %s1044_s29, 4294967040  ;;  %p19_p9 = scmp.ge.s32.totalorder %s1434_s15, 4   ;;  %s1703_s30 = smov %s1335_s10 }
 0x82f   : > { %s1704_s10 = smov %s1339_s11  ;;  %s1705_s11 = smov %s1445_s18 }
 0x830   : > { %s1706_s12 = smov %s1434_s15  ;;  %21 = sbr.rel (!%p19_p9) target bundleno = 3 (0x3), region = 94 }
 0x835   :  { %1050 = vsyncpa [#allocation3], 1 }
 0x836   :  { %1052 = vsyncpa [#allocation3 + $0x1], 1 }

// kernel: tpu_custom_call.1
= control target key start
LH: loop header
LB: loop body
LE: loop exit
PB: predicated region body
PF: predicated region fallthrough
CT: control target
= control target key end

     0   :  { %14 = vsyncpa [#allocation3], 0  ;;  %s1691_s0 = inlined_call_operand.vmem [shape: f32[2,16,32], index: 0, kind: input, shape index: {}]   ;;  %s1692_s1 = inlined_call_operand.vmem [shape: bf16[32,96], index: 1, kind: input, shape index: {}]   ;;  %s1693_s2 = inlined_call_operand.vmem [shape: f32[1,96], index: 2, kind: input, shape index: {}]   ;;  %s1694_s3 = inlined_call_operand.vmem [shape: bf16[4,8,32], index: 3, kind: input, shape index: {}]   ;;  %s1695_s4 = inlined_call_operand.vmem [shape: f32[1,32], index: 4, kind: input, shape index: {}]   ;;  %s1696_s5 = inlined_call_operand.vmem [shape: bf16[32,128], index: 5, kind: input, shape index: {}]   ;;  %s1697_s6 = inlined_call_operand.vmem [shape: f32[1,128], index: 6, kind: input, shape index: {}]   ;;  %s1698_s7 = inlined_call_operand.vmem [shape: bf16[128,32], index: 7, kind: input, shape index: {}]   ;;  %s1699_s8 = inlined_call_operand.vmem [shape: f32[1,32], index: 8, kind: input, shape index: {}]   ;;  %s1700_s9 = inlined_call_operand.hbm [shape: f32[2,16,32], index: 9, kind: output, shape index: {}]  }
   0x1   :  { %16 = vsyncpa [#allocation3 + $0x1], 0  ;;  %s1409_s30 = smov 0   ;;  %s1411_s10 = smov 0  }
   0x2   :  { %s1413_s11 = smov 0   ;;  %s1415_s12 = smov 0  }
   0x3 LB: > { %s1430_s13 = sadd.s32 4294967295, %s1343_s12   ;;  %s1091_s14 = sadd.s32 4294967294, %s1343_s12   ;;  %s1343_s12 = sphi %s1415_s12, %s1706_s12   ;;  %s1339_s11 = sphi %s1413_s11, %s1705_s11   ;;  %s1335_s10 = sphi %s1411_s10, %s1704_s10   ;;  %s1331_s30 = sphi %s1409_s30, %s1703_s30  }
   0x4   : > { %s1434_s15 = sadd.s32 1, %s1343_s12   ;;  %s223_s16 = sadd.s32 1, %s1339_s11 }
   0x5   : > { %s220_s17 = ssub.s32 %s1343_s12, %s1434_s15  ;;  %p233_p0 = scmp.ne.s32.totalorder %s1339_s11, %s1335_s10 }
   0x6   : > { %p221_p1 = scmp.eq.s32.totalorder %s220_s17, 0  ;;  %p234_p2 = scmp.eq.s32.totalorder %s1430_s13, 1 }
   0x7   : > { %p239_p3 = scmp.ne.s32.totalorder %s1335_s10, %s1331_s30  ;;  %p240_p4 = scmp.eq.s32.totalorder %s1091_s14, 1 }
   0x8   : > { %s1445_s18 = scalar_select %p221_p1, %s1339_s11, %s223_s16  }
   0x9   : > { %p1447_p5 = por %p234_p2, %p233_p0  ;;  %p1451_p6 = por %p240_p4, %p239_p3 }
   0xa   : > { %p1094_p7 = scmp.ge.s32.totalorder %s1343_s12, 1  ;;  %p290_p8 = scmp.lt.s32.totalorder %s1343_s12, 3 }
   0xc   : > { %p291_p9 = pnand %p1094_p7, %p290_p8 }
   0xd   : > { %p326_p10 = scmp.lt.s32.totalorder (!%p291_p9), %s1430_s13, 1  ;;  %s1346_s17 = smov (!%p291_p9), 64  }
   0xe   : > { %294 = sbr.rel (%p291_p9) target bundleno = 2087 (0x827), region = 56  ;;  %s1349_s23 = smov (!%p291_p9), 80  }
   0xf   : > { %s1350_s24 = smov (!%p291_p9), 112   ;;  %s1352_s26 = smov (!%p291_p9), 88  }
  0x10   : > { %s1353_s29 = smov (!%p291_p9), 104   ;;  %s1354_s14 = smov (!%p291_p9), 56  }
  0x11   : > { %s1355_s16 = smov (!%p291_p9), 40   ;;  %s323_s27 = sand.u32 (!%p291_p9), 1, %s1335_s10  }
  0x13   : > { %s327_s21 = scalar_select %p326_p10, %s1430_s13, 1  ;;  %vm334_vm0 = vcmask 261120   ;;  %v1345_v4 = vmov 32.0   ;;  %v1170_v21 = vld [vmem:[%s1692_s1 + $0x8] sm:$0xff]  ;;  %v1169_v22 = vld [vmem:[%s1692_s1] sm:$0xff]  ;;  %vm440_vm8 = vcmask 64512   ;;  %v426_v59 = vlaneseq }
  0x14   : > { %1239 = vrcp.f32 %v1345_v4  ;;  %416 = vmatpush.bf16.msra.mxu0 %v1170_v21  ;;  %v1235_v47 = vld [vmem:[%s1693_s2] ss:$0 sm:$0xff]  ;;  %vm463_vm10 = vcmask 130048   ;;  %vm596_vm12 = vcmask 1043456  }
  0x15   : > { %s1168_s22 = sshll.u32 %s327_s21, 4  ;;  %s1347_s21 = smov 96   ;;  %v1500_v60 = vshrl.u32 %v426_v59, 7  ;;  %v1502_v61 = vand.u32 127, %v426_v59 }
  0x16   : > { %s330_s25 = scalar_lea.vmem %s1691_s0, %s1168_s22  ;;  %s1348_s22 = smov 120  }
  0x17   : > { %v1462_v0 = vld [vmem:[%s330_s25] sm:$0xff]  ;;  %v1466_v2 = vld [vmem:[%s330_s25 + $0x8] sm:$0xff]  ;;  %vm431_vm9 = vcmp.ge.s32.totalorder %v1500_v60, %v1502_v61  ;;  %s1351_s25 = smov 72  }
  0x18   : > { %v335_v1 = vsel %vm334_vm0, %v1462_v0, 0.0  ;;  %v338_v3 = vsel %vm334_vm0, %v1466_v2, 0.0  ;;  %417 = vmatpush.bf16.msra.mxu0 %v1169_v22 }
  0x19   : > { %336 = vadd.xlane.f32.xlu0 %v335_v1 }
  0x1a   : > { %v1240_v5 = vpop.eup %1239 }
  0x1b   : > { %v342_v6 = vmul.f32 32.0, %v1240_v5  ;;  %vm346_vm1 = vweird.f32 %v1240_v5 }
  0x1d   : > { %v343_v7 = vsub.f32 1.0, %v342_v6 }
  0x1f   : > { %v344_v8 = vmul.f32 %v1240_v5, %v343_v7  ;;  %v514_v7 = vld [vmem:[%s1694_s3] sm:$0xf] }
  0x21   : > { %339 = vadd.xlane.f32.xlu0 %v338_v3  ;;  %v345_v9 = vadd.f32 %v1240_v5, %v344_v8  ;;  %v1511_v3 = vadd.s32 8, %v1500_v60  ;;  %v618_v8 = vsel %vm596_vm12, %v514_v7, 0 }
  0x22   : > { %627 = vmatpush.bf16.msra.mxu1 %v618_v8 }
  0x23   : > { %v1470_v10 = vsel %vm346_vm1, %v1240_v5, %v345_v9  ;;  %vm432_vm11 = vcmp.ge.s32.totalorder %v1511_v3, %v1502_v61 }
  0x8c   : > { %v337_v11 = vpop.xlane.xlu0 %336 }
  0x8d   : > { %v348_v12 = vmul.f32 %v1470_v10, %v337_v11 }
  0x8f   : > { %v350_v13 = vsub.f32 %v1462_v0, %v348_v12 }
  0x91   : > { %v352_v14 = vmul.f32 %v350_v13, %v350_v13 }
  0x93   : > { %v354_v15 = vsel %vm334_vm0, %v352_v14, 0.0 }
  0x94   : > { %355 = vadd.xlane.f32.xlu1 %v354_v15  ;;  %v340_v16 = vpop.xlane.xlu0 %339 }
  0x95   : > { %v349_v17 = vmul.f32 %v1470_v10, %v340_v16 }
  0x97   : > { %v351_v18 = vsub.f32 %v1466_v2, %v349_v17 }
  0x99   : > { %v353_v19 = vmul.f32 %v351_v18, %v351_v18 }
  0x9b   : > { %v357_v20 = vsel %vm334_vm0, %v353_v19, 0.0 }
  0x9c   : > { %358 = vadd.xlane.f32.xlu1 %v357_v20 }
 0x107   : > { %v356_v23 = vpop.xlane.xlu1 %355 }
 0x108   : > { %v360_v24 = vmul.f32 %v356_v23, %v1470_v10 }
 0x10a   : > { %v362_v25 = vadd.f32 1e-05, %v360_v24 }
 0x10c   : > { %1241 = vrsqrt.f32 %v362_v25  ;;  %vm370_vm3 = vweird.f32 %v362_v25 }
 0x10f   : > { %v359_v26 = vpop.xlane.xlu1 %358 }
 0x110   : > { %v361_v27 = vmul.f32 %v359_v26, %v1470_v10 }
 0x112   : > { %v1242_v28 = vpop.eup %1241  ;;  %v363_v29 = vadd.f32 1e-05, %v361_v27 }
 0x113   : > { %v365_v30 = vmul.f32 %v1242_v28, %v362_v25  ;;  %vm371_vm2 = vweird.f32 %v1242_v28 }
 0x114   : > { %1243 = vrsqrt.f32 %v363_v29  ;;  %vm372_vm5 = vmor %vm370_vm3, %vm371_vm2  ;;  %vm380_vm6 = vweird.f32 %v363_v29 }
 0x115   : > { %v366_v31 = vmul.f32 %v1242_v28, %v365_v30 }
 0x117   : > { %v367_v32 = vmul.f32 0.5, %v366_v31 }
 0x119   : > { %v368_v34 = vsub.f32 1.5, %v367_v32 }
 0x11a   : > { %v1244_v33 = vpop.eup %1243 }
 0x11b   : > { %v375_v35 = vmul.f32 %v1244_v33, %v363_v29  ;;  %v369_v37 = vmul.f32 %v1242_v28, %v368_v34  ;;  %vm381_vm4 = vweird.f32 %v1244_v33 }
 0x11c   : > { %vm382_vm7 = vmor %vm380_vm6, %vm381_vm4 }
 0x11d   : > { %v376_v36 = vmul.f32 %v1244_v33, %v375_v35  ;;  %v373_v41 = vsel %vm372_vm5, %v1242_v28, %v369_v37 }
 0x11e   : > { %v384_v43 = vmul.f32 %v373_v41, %v350_v13 }
 0x11f   : > { %v377_v38 = vmul.f32 0.5, %v376_v36 }
 0x121   : > { %v378_v39 = vsub.f32 1.5, %v377_v38 }
 0x123   : > { %v379_v40 = vmul.f32 %v1244_v33, %v378_v39 }
 0x125   : > { %v383_v42 = vsel %vm382_vm7, %v1244_v33, %v379_v40 }
 0x126   : > { %v385_v44 = vmul.f32 %v383_v42, %v351_v18 }
 0x128   : > { %v386_v45 = vpack.c.bf16 %v385_v44, %v384_v43 }
 0x12a   : > { %1106 = vmatmul.msk.bf16.vlgmr.msra.gmra.mxu0 %vm334_vm0, %v386_v45 }
 0x1a7   : > { %v419_v46 = vpop.f32.mrf.mxu0 }
 0x1a8   : > { %v420_v48 = vadd.f32 %v1235_v47, %v419_v46 }
 0x1aa   : > { %v424_v50 = vpack.c.bf16 %v420_v48, %v420_v48 }
 0x1ac   : > { %v435_v53 = vunpack.c.l.b16 %v424_v50 }
 0x1af   : > { %v421_v49 = vpop.f32.mrf.mxu0 }
 0x1b0   : > { %v422_v51 = vadd.f32 %v1235_v47, %v421_v49 }
 0x1b2   : > { %v425_v52 = vpack.c.bf16 %v422_v51, %v422_v51 }
 0x1b4   : > { %v436_v54 = vunpack.c.l.b16 %v425_v52 }
 0x1b6   : > { %v1490_v55 = vpack.c.b16 %v436_v54, %v435_v53 }
 0x1b8   : > { %489 = vrot.lane.b32.xlu1 %v1490_v55, %s1346_s17  ;;  %438 = vrot.lane.b32.xlu2 %v1490_v55, %s1347_s21  ;;  %s1356_s17 = smov 48  }
 0x1c0   : > { %515 = vrot.lane.b32.xlu1 %v1490_v55, %s1348_s22 }
 0x1c8   : > { %636 = vrot.lane.b32.xlu1 %v1490_v55, %s1349_s23 }
 0x1d0   : > { %634 = vrot.lane.b32.xlu1 %v1490_v55, %s1350_s24 }
 0x212   : > { %v439_v56 = vpop.permute.xlu2 %438 }
 0x213   : > { %v445_v57 = vsel %vm440_vm8, %v439_v56, 0 }
 0x214   : > { %454 = vmatpush.bf16.xpose.msra.mxu3 %v445_v57 }
 0x21b   : > { %1107 = vmatmul.msk.bf16.vlgmr.msra.gmra.mxu3 %vm440_vm8, %v1490_v55 }
 0x22a   : > { %v490_v58 = vpop.permute.xlu1 %489 }
 0x22b   : > { %502 = vmatpush.bf16.msra.mxu2 %v490_v58 }
 0x232   : > { %v516_v20 = vpop.permute.xlu1 %515 }
 0x23a   : > { %v637_v28 = vpop.permute.xlu1 %636 }
 0x23b   : > { %v642_v31 = vsel %vm440_vm8, %v637_v28, 0 }
 0x242   : > { %v635_v32 = vpop.permute.xlu1 %634 }
 0x29e   : > { %v456_v62 = vpop.f32.mrf.mxu3 }
 0x29f   : > { %v461_v63 = vsel %vm431_vm9, %v456_v62, -1e+30 }
 0x2a0   : > { %v464_v1 = vsel %vm463_vm10, %v461_v63, -inf }
 0x2a1   : > { %465 = vmax.xlane.f32.xlu2 %v464_v1 }
 0x2a6   : > { %v458_v4 = vpop.f32.mrf.mxu3 }
 0x2a7   : > { %v462_v5 = vsel %vm432_vm11, %v458_v4, -1e+30 }
 0x2a8   : > { %v467_v6 = vsel %vm463_vm10, %v462_v5, -inf }
 0x2a9   : > { %468 = vmax.xlane.f32.xlu0 %v467_v6 }
 0x2b9   : > { %736 = vrot.lane.b32.xlu2 %v1490_v55, %s1351_s25 }
 0x2bd   : > { %517 = vrot.lane.b32.xlu0 %v1490_v55, %s1352_s26 }
 0x314   : > { %v466_v9 = vpop.xlane.xlu2 %465 }
 0x315   : > { %v470_v11 = vsub.f32 %v461_v63, %v466_v9 }
 0x317   : > { %v472_v12 = vmul.f32 1.442695, %v470_v11 }
 0x319   : > { %1245 = vpow2.f32 %v472_v12 }
 0x31c   : > { %v737_v13 = vpop.permute.xlu2 %736  ;;  %v469_v14 = vpop.xlane.xlu0 %468 }
 0x31d   : > { %v471_v15 = vsub.f32 %v462_v5, %v469_v14  ;;  %v742_v16 = vsel %vm440_vm8, %v737_v13, 0 }
 0x31e   : > { %751 = vmatpush.bf16.xpose.msrb.mxu1 %v742_v16 }
 0x31f   : > { %v1246_v17 = vpop.eup %1245  ;;  %v474_v18 = vmul.f32 1.442695, %v471_v15 }
 0x320   : > { %v476_v19 = vsel %vm463_vm10, %v1246_v17, 0.0  ;;  %v482_v21 = vpack.c.bf16 %v1246_v17, %v1246_v17 }
 0x321   : > { %1247 = vpow2.f32 %v474_v18  ;;  %477 = vadd.xlane.f32.xlu0 %v476_v19 }
 0x322   : > { %v486_v25 = vunpack.c.l.b16 %v482_v21 }
 0x327   : > { %v1248_v22 = vpop.eup %1247 }
 0x328   : > { %v479_v23 = vsel %vm463_vm10, %v1248_v22, 0.0  ;;  %v483_v24 = vpack.c.bf16 %v1248_v22, %v1248_v22 }
 0x329   : > { %480 = vadd.xlane.f32.xlu0 %v479_v23 }
 0x32a   : > { %v487_v26 = vunpack.c.l.b16 %v483_v24 }
 0x32c   : > { %v488_v27 = vpack.c.b16 %v487_v26, %v486_v25 }
 0x32e   : > { %1108 = vmatmul.msk.bf16.vlgmr.msra.gmra.mxu2 %vm463_vm10, %v488_v27 }
 0x32f   : > { %v518_v29 = vpop.permute.xlu0 %517 }
 0x330   : > { %v523_v30 = vsel %vm440_vm8, %v518_v29, 0 }
 0x331   : > { %532 = vmatpush.bf16.xpose.msrb.mxu3 %v523_v30 }
 0x338   : > { %1109 = vmatmul.msk.bf16.vlgmr.msrb.gmra.mxu3 %vm440_vm8, %v516_v20 }
 0x339   : > { %651 = vmatpush.bf16.xpose.msra.mxu3 %v642_v31 }
 0x33d   : > { %734 = vrot.lane.b32.xlu0 %v1490_v55, %s1353_s29 }
 0x348   : > { %1114 = vmatmul.msk.bf16.vlgmr.msra.gmra.mxu3 %vm440_vm8, %v635_v32 }
 0x394   : > { %v478_v33 = vpop.xlane.xlu0 %477 }
 0x395   : > { %1249 = vrcp.f32 %v478_v33 }
 0x39b   : > { %v1250_v36 = vpop.eup %1249 }
 0x39c   : > { %v481_v34 = vpop.xlane.xlu0 %480 }
 0x39d   : > { %1251 = vrcp.f32 %v481_v34 }
 0x3a3   : > { %v1252_v37 = vpop.eup %1251 }
 0x3af   : > { %v735_v50 = vpop.permute.xlu0 %734 }
 0x3b1   : > { %v504_v35 = vpop.f32.mrf.mxu2 }
 0x3b2   : > { %v511_v39 = vmul.f32 %v1250_v36, %v504_v35 }
 0x3b9   : > { %v506_v38 = vpop.f32.mrf.mxu2 }
 0x3ba   : > { %v512_v40 = vmul.f32 %v1252_v37, %v506_v38 }
 0x3bb   : > { %v534_v41 = vpop.f32.mrf.mxu3 }
 0x3bc   : > { %v513_v42 = vpack.c.bf16 %v512_v40, %v511_v39  ;;  %v539_v43 = vsel %vm431_vm9, %v534_v41, -1e+30 }
 0x3bd   : > { %v541_v44 = vsel %vm463_vm10, %v539_v43, -inf }
 0x3be   : > { %542 = vmax.xlane.f32.xlu1 %v541_v44  ;;  %1113 = vmatmul.msk.bf16.vlgmr.msra.gmra.mxu1 %vm440_vm8, %v513_v42 }
 0x3c3   : > { %v536_v45 = vpop.f32.mrf.mxu3 }
 0x3c4   : > { %v540_v46 = vsel %vm432_vm11, %v536_v45, -1e+30 }
 0x3c5   : > { %v544_v47 = vsel %vm463_vm10, %v540_v46, -inf }
 0x3c6   : > { %545 = vmax.xlane.f32.xlu0 %v544_v47 }
 0x3cb   : > { %v653_v48 = vpop.f32.mrf.mxu3 }
 0x3cc   : > { %v1546_v49 = vsel %vm431_vm9, %v653_v48, -1e+30 }
 0x3cd   : > { %v660_v51 = vsel %vm463_vm10, %v1546_v49, -inf }
 0x3ce   : > { %661 = vmax.xlane.f32.xlu2 %v660_v51  ;;  %1118 = vmatmul.msk.bf16.vlgmr.msrb.gmra.mxu1 %vm440_vm8, %v735_v50  ;;  %v1111_v50 = vld [vmem:[%s1694_s3 + $0x4] sm:$0xf] }
 0x3cf   : > { %v598_v51 = vsel %vm596_vm12, %v1111_v50, 0  ;;  %v1171_v50 = vld [vmem:[%s1696_s5] sm:$0xff] }
 0x3d0   : > { %607 = vmatpush.bf16.msrb.mxu0 %v598_v51 }
 0x3d3   : > { %v655_v52 = vpop.f32.mrf.mxu3 }
 0x3d4   : > { %v659_v53 = vsel %vm432_vm11, %v655_v52, -1e+30 }
 0x3d5   : > { %v663_v54 = vsel %vm463_vm10, %v659_v53, -inf }
 0x3d6   : > { %664 = vmax.xlane.f32.xlu1 %v663_v54 }
 0x3da   : > { %566 = vrot.lane.b32.xlu0 %v1490_v55, %s1354_s14  ;;  %s1095_s14 = sshll.u32 %s323_s27, 4 }
 0x3db   : > { %s325_s23 = scalar_lea.vmem [#allocation2], %s1095_s14 }
 0x3dc   : > { %s1026_s24 = sshll.u32 %s325_s23, 4  ;;  %s1027_s24 = int_to_ptr.vmem [resolvable:$true] %s1026_s24 }
 0x431   : > { %v543_v56 = vpop.xlane.xlu1 %542 }
 0x432   : > { %v547_v57 = vsub.f32 %v539_v43, %v543_v56 }
 0x434   : > { %v549_v58 = vmul.f32 1.442695, %v547_v57 }
 0x436   : > { %1253 = vpow2.f32 %v549_v58 }
 0x439   : > { %v546_v59 = vpop.xlane.xlu0 %545 }
 0x43a   : > { %v548_v62 = vsub.f32 %v540_v46, %v546_v59 }
 0x43b   : > { %v1556_v63 = vpop.f32.mrf.mxu1 }
 0x43c   : > { %v1254_v1 = vpop.eup %1253  ;;  %v551_v4 = vmul.f32 1.442695, %v548_v62 }
 0x43d   : > { %v553_v5 = vsel %vm463_vm10, %v1254_v1, 0.0  ;;  %v559_v9 = vpack.c.bf16 %v1254_v1, %v1254_v1 }
 0x43e   : > { %1255 = vpow2.f32 %v551_v4  ;;  %554 = vadd.xlane.f32.xlu0 %v553_v5  ;;  %v1120_v4 = vld [vmem:[%s1694_s3 + $0xc] sm:$0xf] }
 0x43f   : > { %v563_v13 = vunpack.c.l.b16 %v559_v9  ;;  %v816_v5 = vsel %vm596_vm12, %v1120_v4, 0 }
 0x441   : > { %v662_v3 = vpop.xlane.xlu2 %661 }
 0x442   : > { %v666_v31 = vsub.f32 %v1546_v49, %v662_v3 }
 0x443   : > { %v1559_v6 = vpop.f32.mrf.mxu1 }
 0x444   : > { %v1256_v7 = vpop.eup %1255  ;;  %v668_v34 = vmul.f32 1.442695, %v666_v31  ;;  %v1236_v31 = vld [vmem:[%s1695_s4] ss:$0 sm:$0xff] }
 0x445   : > { %v560_v8 = vpack.c.bf16 %v1256_v7, %v1256_v7  ;;  %v556_v23 = vsel %vm463_vm10, %v1256_v7, 0.0  ;;  %v1116_v7 = vld [vmem:[%s1694_s3 + $0x8] sm:$0xf] }
 0x447   : > { %v564_v11 = vunpack.c.l.b16 %v560_v8  ;;  %v716_v8 = vsel %vm596_vm12, %v1116_v7, 0 }
 0x448   : > { %725 = vmatpush.bf16.msra.mxu0 %v716_v8 }
 0x449   : > { %v565_v17 = vpack.c.b16 %v564_v11, %v563_v13  ;;  %v665_v60 = vpop.xlane.xlu1 %664 }
 0x44a   : > { %v667_v21 = vsub.f32 %v659_v53, %v665_v60 }
 0x44b   : > { %v753_v12 = vpop.f32.mrf.mxu1 }
 0x44c   : > { %v758_v14 = vsel %vm431_vm9, %v753_v12, -1e+30  ;;  %v567_v15 = vpop.permute.xlu0 %566  ;;  %v670_v22 = vmul.f32 1.442695, %v667_v21 }
 0x44d   : > { %579 = vmatpush.bf16.msrb.mxu2 %v567_v15  ;;  %v760_v16 = vsel %vm463_vm10, %v758_v14, -inf }
 0x44e   : > { %761 = vmax.xlane.f32.xlu2 %v760_v16  ;;  %1257 = vpow2.f32 %v670_v22 }
 0x450   : > { %1110 = vmatmul.msk.bf16.vlgmr.msrb.gmra.mxu2 %vm463_vm10, %v565_v17 }
 0x453   : > { %v755_v18 = vpop.f32.mrf.mxu1 }
 0x454   : > { %v759_v19 = vsel %vm432_vm11, %v755_v18, -1e+30  ;;  %v1258_v24 = vpop.eup %1257 }
 0x455   : > { %v763_v20 = vsel %vm463_vm10, %v759_v19, -inf  ;;  %v675_v61 = vsel %vm463_vm10, %v1258_v24, 0.0  ;;  %v679_v43 = vpack.c.bf16 %v1258_v24, %v1258_v24 }
 0x456   : > { %764 = vmax.xlane.f32.xlu1 %v763_v20 }
 0x457   : > { %v683_v46 = vunpack.c.l.b16 %v679_v43 }
 0x466   : > { %785 = vrot.lane.b32.xlu2 %v1490_v55, %s1355_s16  ;;  %s1181_s16 = sshll.u32 %s1430_s13, 4  ;;  %s1014_s13 = scalar_lea.sflag [#allocation3], %s323_s27 }
 0x467   : > { %s1025_s22 = scalar_lea.hbm %s1700_s9, %s1181_s16  ;;  %s1301_s16 = scalar_lea.hbm %s1700_s9, 32 }
 0x468   : > { %s1028_s25 = sshll.u32 %s1025_s22, 4  ;;  %s1029_s25 = int_to_ptr.hbm [resolvable:$true] %s1028_s25 }
 0x469   : > { %s1295_s26 = sshra.s32 %s1029_s25, 4  ;;  %s1296_s26 = int_to_ptr.hbm [resolvable:$true] %s1295_s26 }
 0x46a   : > { %s1297_s28 = scalar_lea.hbm %s1296_s26, 16  ;;  %p1302_p0 = scmp.lt.s32.totalorder %s1296_s26, %s1700_s9 }
 0x46b   : > { %p1298_p11 = scmp.ne.s32.totalorder %s1296_s26, %s1297_s28  ;;  %p1303_p1 = scmp.lt.s32.totalorder %s1301_s16, %s1297_s28 }
 0x46d   : > { %p1299_p12 = pnand %p1298_p11, %p1447_p5  ;;  %p1304_p2 = por %p1303_p1, %p1302_p0 }
 0x46f   : > { %685 = vrot.lane.b32.xlu1 %v1490_v55, %s1356_s17  ;;  %p1300_p13 = pneg %p1299_p12 }
 0x471   : > { %p1305_p3 = pnand %p1304_p2, %p1300_p13 }
 0x48f   : > { %557 = vadd.xlane.f32.xlu2 %v556_v23 }
 0x497   : > { %676 = vadd.xlane.f32.xlu2 %v675_v61 }
 0x4b1   : > { %v555_v52 = vpop.xlane.xlu0 %554 }
 0x4c1   : > { %v762_v25 = vpop.xlane.xlu2 %761 }
 0x4c2   : > { %v766_v26 = vsub.f32 %v758_v14, %v762_v25 }
 0x4c4   : > { %v768_v27 = vmul.f32 1.442695, %v766_v26 }
 0x4c6   : > { %1259 = vpow2.f32 %v768_v27 }
 0x4c9   : > { %v786_v28 = vpop.permute.xlu2 %785  ;;  %v765_v29 = vpop.xlane.xlu1 %764 }
 0x4ca   : > { %v767_v30 = vsub.f32 %v759_v19, %v765_v29  ;;  %798 = vmatpush.bf16.msrb.mxu3 %v786_v28 }
 0x4cc   : > { %v1260_v55 = vpop.eup %1259  ;;  %v770_v32 = vmul.f32 1.442695, %v767_v30 }
 0x4cd   : > { %v772_v33 = vsel %vm463_vm10, %v1260_v55, 0.0  ;;  %v778_v35 = vpack.c.bf16 %v1260_v55, %v1260_v55 }
 0x4ce   : > { %1261 = vpow2.f32 %v770_v32  ;;  %773 = vadd.xlane.f32.xlu1 %v772_v33 }
 0x4cf   : > { %1263 = vpow2.f32 %v668_v34  ;;  %v782_v39 = vunpack.c.l.b16 %v778_v35 }
 0x4d0   : > { %1265 = vrcp.f32 %v555_v52 }
 0x4d3   : > { %v581_v53 = vpop.f32.mrf.mxu2 }
 0x4d4   : > { %v1262_v36 = vpop.eup %1261 }
 0x4d5   : > { %v779_v37 = vpack.c.bf16 %v1262_v36, %v1262_v36  ;;  %v775_v38 = vsel %vm463_vm10, %v1262_v36, 0.0  ;;  %v1264_v42 = vpop.eup %1263 }
 0x4d6   : > { %776 = vadd.xlane.f32.xlu0 %v775_v38  ;;  %v678_v44 = vpack.c.bf16 %v1264_v42, %v1264_v42  ;;  %v672_v45 = vsel %vm463_vm10, %v1264_v42, 0.0  ;;  %v1266_v56 = vpop.eup %1265 }
 0x4d7   : > { %v783_v40 = vunpack.c.l.b16 %v779_v37  ;;  %v588_v59 = vmul.f32 %v1266_v56, %v581_v53  ;;  %v1179_v56 = vld [vmem:[%s1698_s7 + $0x30] sm:$0xff] }
 0x4d8   : > { %v682_v47 = vunpack.c.l.b16 %v678_v44 }
 0x4d9   : > { %v784_v41 = vpack.c.b16 %v783_v40, %v782_v39 }
 0x4da   : > { %v684_v49 = vpack.c.b16 %v683_v46, %v682_v47 }
 0x4db   : > { %1119 = vmatmul.msk.bf16.vlgmr.msrb.gmra.mxu3 %vm463_vm10, %v784_v41  ;;  %v583_v58 = vpop.f32.mrf.mxu2 }
 0x4de   : > { %673 = vadd.xlane.f32.xlu0 %v672_v45 }
 0x4e1   : > { %v686_v48 = vpop.permute.xlu1 %685 }
 0x4e2   : > { %698 = vmatpush.bf16.msra.mxu2 %v686_v48 }
 0x4e5   : > { %1115 = vmatmul.msk.bf16.vlgmr.msra.gmra.mxu2 %vm463_vm10, %v684_v49  ;;  %v1172_v49 = vld [vmem:[%s1696_s5 + $0x8] sm:$0xff] }
 0x4e6   : > { %825 = vmatpush.bf16.msrb.mxu2 %v816_v5  ;;  %v1177_v5 = vld [vmem:[%s1698_s7 + $0x20] sm:$0xff] }
 0x502   : > { %v558_v54 = vpop.xlane.xlu2 %557 }
 0x503   : > { %1267 = vrcp.f32 %v558_v54  ;;  %v1180_v54 = vld [vmem:[%s1698_s7 + $0x38] sm:$0xff] }
 0x504   : > { %995 = vmatpush.bf16.msra.mxu1 %v1180_v54 }
 0x508   : > { %996 = vmatpush.bf16.msra.mxu1 %v1179_v56 }
 0x509   : > { %v1268_v57 = vpop.eup %1267 }
 0x50a   : > { %v589_v62 = vmul.f32 %v1268_v57, %v583_v58  ;;  %v677_v15 = vpop.xlane.xlu2 %676 }
 0x50c   : > { %v590_v1 = vpack.c.bf16 %v589_v62, %v588_v59  ;;  %v1178_v59 = vld [vmem:[%s1698_s7 + $0x28] sm:$0xff] }
 0x50d   : > { %997 = vmatpush.bf16.msra.mxu1 %v1178_v59 }
 0x50e   : > { %1112 = vmatmul.msk.bf16.vlgmr.msrb.gmra.mxu0 %vm440_vm8, %v590_v1 }
 0x50f   : > { %916 = vmatpush.bf16.msrb.mxu0 %v1172_v49 }
 0x511   : > { %998 = vmatpush.bf16.msra.mxu1 %v1177_v5 }
 0x513   : > { %917 = vmatpush.bf16.msrb.mxu0 %v1171_v50 }
 0x541   : > { %v774_v9 = vpop.xlane.xlu1 %773 }
 0x542   : > { %1269 = vrcp.f32 %v774_v9 }
 0x548   : > { %v1270_v13 = vpop.eup %1269 }
 0x549   : > { %v777_v11 = vpop.xlane.xlu0 %776 }
 0x54a   : > { %1271 = vrcp.f32 %v777_v11 }
 0x54b   : > { %1273 = vrcp.f32 %v677_v15 }
 0x550   : > { %v1272_v14 = vpop.eup %1271 }
 0x551   : > { %v674_v17 = vpop.xlane.xlu0 %673  ;;  %v1274_v21 = vpop.eup %1273 }
 0x552   : > { %1275 = vrcp.f32 %v674_v17 }
 0x558   : > { %v1276_v22 = vpop.eup %1275 }
 0x55e   : > { %v800_v12 = vpop.f32.mrf.mxu3 }
 0x55f   : > { %v807_v18 = vmul.f32 %v1270_v13, %v800_v12 }
 0x566   : > { %v802_v16 = vpop.f32.mrf.mxu3 }
 0x567   : > { %v808_v19 = vmul.f32 %v1272_v14, %v802_v16 }
 0x568   : > { %v700_v20 = vpop.f32.mrf.mxu2 }
 0x569   : > { %v809_v60 = vpack.c.bf16 %v808_v19, %v807_v18  ;;  %v707_v24 = vmul.f32 %v1276_v22, %v700_v20  ;;  %v1175_v22 = vld [vmem:[%s1698_s7 + $0x10] sm:$0xff] }
 0x56b   : > { %1121 = vmatmul.msk.bf16.vlgmr.msrb.gmra.mxu2 %vm440_vm8, %v809_v60 }
 0x570   : > { %v702_v23 = vpop.f32.mrf.mxu2 }
 0x571   : > { %v708_v61 = vmul.f32 %v1274_v21, %v702_v23  ;;  %v1176_v21 = vld [vmem:[%s1698_s7 + $0x18] sm:$0xff]  ;;  %v1174_v23 = vld [vmem:[%s1698_s7 + $0x8] sm:$0xff] }
 0x572   : > { %999 = vmatpush.bf16.msra.mxu1 %v1176_v21 }
 0x573   : > { %v709_v3 = vpack.c.bf16 %v708_v61, %v707_v24  ;;  %v1173_v24 = vld [vmem:[%s1698_s7] sm:$0xff] }
 0x575   : > { %1117 = vmatmul.msk.bf16.vlgmr.msra.gmra.mxu0 %vm440_vm8, %v709_v3  ;;  %v1237_v3 = vld [vmem:[%s1697_s6] ss:$0 sm:$0xff] }
 0x576   : > { %1000 = vmatpush.bf16.msra.mxu1 %v1175_v22 }
 0x57a   : > { %1001 = vmatpush.bf16.msra.mxu1 %v1174_v23 }
 0x57e   : > { %1002 = vmatpush.bf16.msra.mxu1 %v1173_v24 }
 0x58b   : > { %v609_v25 = vpop.f32.mrf.mxu0 }
 0x58c   : > { %v630_v27 = vadd.f32 %v1556_v63, %v609_v25 }
 0x593   : > { %v611_v26 = vpop.f32.mrf.mxu0 }
 0x594   : > { %v632_v33 = vadd.f32 %v1559_v6, %v611_v26 }
 0x5ee   : > { %v827_v28 = vpop.f32.mrf.mxu2 }
 0x5f2   : > { %v727_v29 = vpop.f32.mrf.mxu0 }
 0x5f3   : > { %v732_v30 = vadd.f32 %v727_v29, %v630_v27 }
 0x5f5   : > { %v832_v55 = vadd.f32 %v827_v28, %v732_v30 }
 0x5f6   : > { %v829_v63 = vpop.f32.mrf.mxu2 }
 0x5f7   : > { %v834_v32 = vadd.f32 %v832_v55, %v1462_v0  ;;  %v1238_v55 = vld [vmem:[%s1699_s8] ss:$0 sm:$0xff] }
 0x5f9   : > { %v1601_v34 = vadd.f32 %v1236_v31, %v834_v32 }
 0x5fa   : > { %v729_v35 = vpop.f32.mrf.mxu0 }
 0x5fb   : > { %v733_v36 = vadd.f32 %v729_v35, %v632_v33  ;;  %v842_v37 = vsel %vm334_vm0, %v1601_v34, 0.0 }
 0x5fc   : > { %843 = vadd.xlane.f32.xlu0 %v842_v37 }
 0x5fd   : > { %v833_v38 = vadd.f32 %v829_v63, %v733_v36 }
 0x5ff   : > { %v835_v39 = vadd.f32 %v833_v38, %v1466_v2 }
 0x601   : > { %v1606_v40 = vadd.f32 %v1236_v31, %v835_v39 }
 0x603   : > { %v845_v41 = vsel %vm334_vm0, %v1606_v40, 0.0 }
 0x604   : > { %846 = vadd.xlane.f32.xlu1 %v845_v41 }
 0x66f   : > { %v844_v0 = vpop.xlane.xlu0 %843 }
 0x670   : > { %v848_v6 = vmul.f32 %v844_v0, %v1470_v10 }
 0x672   : > { %v850_v42 = vsub.f32 %v1601_v34, %v848_v6 }
 0x674   : > { %v852_v43 = vmul.f32 %v850_v42, %v850_v42 }
 0x676   : > { %v854_v44 = vsel %vm334_vm0, %v852_v43, 0.0 }
 0x677   : > { %855 = vadd.xlane.f32.xlu2 %v854_v44  ;;  %v847_v45 = vpop.xlane.xlu1 %846 }
 0x678   : > { %v849_v46 = vmul.f32 %v847_v45, %v1470_v10 }
 0x67a   : > { %v851_v2 = vsub.f32 %v1606_v40, %v849_v46 }
 0x67c   : > { %v853_v47 = vmul.f32 %v851_v2, %v851_v2 }
 0x67e   : > { %v857_v48 = vsel %vm334_vm0, %v853_v47, 0.0 }
 0x67f   : > { %858 = vadd.xlane.f32.xlu0 %v857_v48 }
 0x6ea   : > { %v856_v51 = vpop.xlane.xlu2 %855 }
 0x6eb   : > { %v860_v52 = vmul.f32 %v856_v51, %v1470_v10 }
 0x6ed   : > { %v862_v53 = vadd.f32 1e-05, %v860_v52 }
 0x6ef   : > { %1277 = vrsqrt.f32 %v862_v53  ;;  %vm870_vm14 = vweird.f32 %v862_v53 }
 0x6f2   : > { %v859_v57 = vpop.xlane.xlu0 %858 }
 0x6f3   : > { %v861_v58 = vmul.f32 %v859_v57, %v1470_v10 }
 0x6f5   : > { %v1278_v62 = vpop.eup %1277  ;;  %v863_v1 = vadd.f32 1e-05, %v861_v58 }
 0x6f6   : > { %v865_v4 = vmul.f32 %v1278_v62, %v862_v53  ;;  %vm871_vm13 = vweird.f32 %v1278_v62 }
 0x6f7   : > { %1279 = vrsqrt.f32 %v863_v1  ;;  %vm872_vm1 = vmor %vm870_vm14, %vm871_vm13  ;;  %vm880_vm2 = vweird.f32 %v863_v1 }
 0x6f8   : > { %v866_v7 = vmul.f32 %v1278_v62, %v865_v4 }
 0x6fa   : > { %v867_v8 = vmul.f32 0.5, %v866_v7 }
 0x6fc   : > { %v868_v11 = vsub.f32 1.5, %v867_v8 }
 0x6fd   : > { %v1280_v9 = vpop.eup %1279 }
 0x6fe   : > { %v875_v10 = vmul.f32 %v1280_v9, %v863_v1  ;;  %v869_v13 = vmul.f32 %v1278_v62, %v868_v11  ;;  %vm881_vm15 = vweird.f32 %v1280_v9 }
 0x6ff   : > { %vm882_vm3 = vmor %vm880_vm2, %vm881_vm15 }
 0x700   : > { %v876_v12 = vmul.f32 %v1280_v9, %v875_v10  ;;  %v873_v16 = vsel %vm872_vm1, %v1278_v62, %v869_v13 }
 0x701   : > { %v884_v19 = vmul.f32 %v873_v16, %v850_v42 }
 0x702   : > { %v877_v14 = vmul.f32 0.5, %v876_v12 }
 0x704   : > { %v878_v15 = vsub.f32 1.5, %v877_v14 }
 0x706   : > { %v879_v17 = vmul.f32 %v1280_v9, %v878_v15 }
 0x708   : > { %v883_v18 = vsel %vm882_vm3, %v1280_v9, %v879_v17 }
 0x709   : > { %v885_v20 = vmul.f32 %v883_v18, %v851_v2 }
 0x70b   : > { %v886_v60 = vpack.c.bf16 %v885_v20, %v884_v19 }
 0x70d   : > { %1130 = vmatmul.msk.bf16.vlgmr.msrb.gmra.mxu0 %vm334_vm0, %v886_v60 }
 0x78a   : > { %v919_v61 = vpop.f32.mrf.mxu0 }
 0x78b   : > { %v920_v25 = vadd.f32 %v1237_v3, %v919_v61 }
 0x78d   : > { %v924_v28 = vmax.f32 %v920_v25, 0.0 }
 0x792   : > { %v921_v26 = vpop.f32.mrf.mxu0 }
 0x793   : > { %v922_v27 = vadd.f32 %v1237_v3, %v921_v26 }
 0x795   : > { %v925_v29 = vmax.f32 %v922_v27, 0.0 }
 0x797   : > { %v926_v30 = vpack.c.bf16 %v925_v29, %v924_v28 }
 0x799   : > { %1003 = vmatmul.bf16.vlgmr.msra.gmra.mxu1 %v926_v30 }
 0x816   : > { %v1004_v31 = vpop.f32.mrf.mxu1 }
 0x817   : > { %v1005_v32 = vadd.f32 %v1238_v55, %v1004_v31 }
 0x819   : > { %v1009_v33 = vadd.f32 %v1005_v32, %v1601_v34 }
 0x81b   : > { %1011 = vst.msk [vmem:[%s325_s23] sm:$0xff] %vm334_vm0, %v1009_v33 }
 0x81e   : > { %v1006_v35 = vpop.f32.mrf.mxu1 }
 0x81f   : > { %v1007_v36 = vadd.f32 %v1238_v55, %v1006_v35 }
 0x821   : > { %v1010_v37 = vadd.f32 %v1007_v36, %v1606_v40 }
 0x823   : > { %1012 = vst.msk [vmem:[%s325_s23 + $0x8] sm:$0xff] %vm334_vm0, %v1010_v37 }
 0x824   : > { %1308 = shalt.err (!%p1305_p3)
}
 0x825   : > { %s1357_s27 = smov 128   ;;  %s1358_s22 = smov 8  }
 0x826   : > { %1182 = dma.vmem_to_hbm [thread:$0]  (%p1447_p5), %s1027_s24, 256, %s1029_s25, %s1014_s13, %s1357_s27, %s1357_s27, %s1358_s22  }
 0x827 PF: > { %p1188_p4 = scmp.ge.s32.totalorder %s1343_s12, 2  ;;  %s1043_s23 = sand.u32 1, %s1331_s30  }
 0x828   : > { %s1044_s29 = scalar_lea.sflag [#allocation3], %s1043_s23 }
 0x829   : > { %p1185_p7 = pnand %p1188_p4, %p1451_p6 }
 0x82b   : > { %p1186_p8 = pneg %p1185_p7 }
 0x82d   : > { %1326 = dma.done.wait (%p1186_p8), %s1044_s29, 256  }
 0x82e   : > { %1328 = vsyncadd (%p1186_p8), %s1044_s29, 4294967040  ;;  %p19_p9 = scmp.ge.s32.totalorder %s1434_s15, 4   ;;  %s1703_s30 = smov %s1335_s10 }
 0x82f   : > { %s1704_s10 = smov %s1339_s11  ;;  %s1705_s11 = smov %s1445_s18 }
 0x830   : > { %s1706_s12 = smov %s1434_s15  ;;  %21 = sbr.rel (!%p19_p9) target bundleno = 3 (0x3), region = 94 }
 0x835   :  { %1050 = vsyncpa [#allocation3], 1 }
 0x836   :  { %1052 = vsyncpa [#allocation3 + $0x1], 1 }

</bundles_post_ra>
